<compile_context>
chip_gen: v5e
topology: v5e:2x2
jax: 0.10.0
libtpu: 0.0.40
codegen_flags: <defaults>
</compile_context>

<pallas_src>
import functools
import math

import jax
import jax.numpy as jnp
from jax.experimental import pallas as pl
from jax.experimental.pallas import tpu as pltpu


# ----------------------------------------------------------------------------
# Kernel bodies
# ----------------------------------------------------------------------------

def _attention_heads(qp, kp, vp, bias, att_ref, cat_ref, *, heads_num,
                     inv_scale, compute_dtype):
    """Per-head scaled-dot-product attention on already-projected activations.

    qp/kp/vp: (bb, T, D) values in compute_dtype (D = heads_num * d_k).
    bias:     (bb, T, T) fp32 additive mask bias (0.0 or -999999999.0).
    att_ref:  optional (bb, heads_num, T, T) fp32 output Ref (None = skip).
    cat_ref:  (bb, T, D) compute_dtype VMEM scratch; receives concat(head_i)
              via static lane-offset ref stores (store unit does the merge).
    """
    bb, t, d = qp.shape
    d_k = d // heads_num

    for h in range(heads_num):                 # static unroll (heads_num small)
        sl = slice(h * d_k, (h + 1) * d_k)     # lane-aligned static slice
        s = jnp.einsum("bqd,bkd->bqk", qp[:, :, sl], kp[:, :, sl],
                       preferred_element_type=jnp.float32)
        s = s * inv_scale + bias               # additive mask (no cmp+select)

        s = s - jnp.max(s, axis=-1, keepdims=True)
        e = jnp.exp(s)
        p = e * pl.reciprocal(jnp.sum(e, axis=-1, keepdims=True), approx=True)

        if att_ref is not None:
            att_ref[:, h] = p                  # fp32 probabilities

        oh = jnp.einsum("bqk,bkd->bqd", p.astype(compute_dtype), vp[:, :, sl],
                        preferred_element_type=jnp.float32)
        cat_ref[:, :, sl] = oh.astype(compute_dtype)


def _mha_self_kernel(x_ref, wqkv_ref, wo_ref, bias_ref, *out_refs,
                     heads_num, inv_scale, compute_dtype, with_att):
    """Self-attention (Q = K = V): fused (D, 3D) QKV projection."""
    if with_att:
        o_ref, att_ref, cat_ref = out_refs
    else:
        o_ref, cat_ref = out_refs
        att_ref = None
    bb, t, d = x_ref.shape

    # Fused QKV projection; single fp32 -> bf16 cast of the result.
    qkv = jnp.dot(x_ref[...].reshape(bb * t, d), wqkv_ref[...],
                  preferred_element_type=jnp.float32)          # (bb*T, 3D)
    qkv = qkv.astype(compute_dtype).reshape(bb, t, 3 * d)

    bias = jnp.broadcast_to(bias_ref[...][None], (bb, t, t))   # hoisted once
    _attention_heads(qkv[:, :, :d], qkv[:, :, d:2 * d], qkv[:, :, 2 * d:],
                     bias, att_ref, cat_ref, heads_num=heads_num,
                     inv_scale=inv_scale, compute_dtype=compute_dtype)

    out = jnp.dot(cat_ref[...].reshape(bb * t, d), wo_ref[...],
                  preferred_element_type=jnp.float32)
    o_ref[...] = out.reshape(bb, t, d)


def _mha_cross_kernel(q_ref, k_ref, v_ref, wqkv_ref, wo_ref, bias_ref,
                      *out_refs, heads_num, inv_scale, compute_dtype, with_att):
    """General path: distinct Q, K, V inputs; single packed (D,3D) weight."""
    if with_att:
        o_ref, att_ref, cat_ref = out_refs
    else:
        o_ref, cat_ref = out_refs
        att_ref = None
    bb, t, d = q_ref.shape

    def proj(a_ref, col):  # matmul against a lane-aligned slice of packed W
        r = jnp.dot(a_ref[...].reshape(bb * t, d), wqkv_ref[:, col:col + d],
                    preferred_element_type=jnp.float32)
        return r.astype(compute_dtype).reshape(bb, t, d)

    qp, kp, vp = proj(q_ref, 0), proj(k_ref, d), proj(v_ref, 2 * d)

    bias = jnp.broadcast_to(bias_ref[...][None], (bb, t, t))
    _attention_heads(qp, kp, vp, bias, att_ref, cat_ref, heads_num=heads_num,
                     inv_scale=inv_scale, compute_dtype=compute_dtype)

    out = jnp.dot(cat_ref[...].reshape(bb * t, d), wo_ref[...],
                  preferred_element_type=jnp.float32)
    o_ref[...] = out.reshape(bb, t, d)


# ----------------------------------------------------------------------------
# Wrapper (mirrors MultiHeadAttention.forward, train_flg=False)
# ----------------------------------------------------------------------------

def multi_head_attention(params, Q, K, V, mask, *, heads_num, dropout_rate,
                         train_flg=False, is_self_attention=None,
                         return_attention=True, compute_dtype=jnp.bfloat16,
                         block_b=None):
    """params: W_Q, W_K, W_V, W_O stored as (D_in, D_out) so the kernel computes
    x @ W (equivalent to PyTorch's x @ weight.T).
    mask: (T, T), nonzero = masked position (the boolean mask of the reference).
    Returns (output, attention_score); attention_score is None when
    return_attention=False (skips the O(B*H*T^2) fp32 writeback)."""
    B, T, D = Q.shape
    assert D % heads_num == 0
    d_k = D // heads_num
    inv_scale = 1.0 / math.sqrt(d_k)

    # Eval-mode dropout is a deterministic (1 - p) scale -> fold it into W_O.
    # TODO(synk): train_flg=True stochastic dropout (torch RNG) not reproduced.
    wo = params["W_O"] if train_flg else params["W_O"] * (1.0 - dropout_rate)
    wo = wo.astype(compute_dtype)
    # Single packed projection weight -> one resident VMEM buffer, one DMA.
    wqkv = jnp.concatenate([params["W_Q"], params["W_K"], params["W_V"]],
                           axis=1).astype(compute_dtype)
    # Additive mask bias (replaces in-kernel compare + select).
    bias = mask.astype(jnp.float32) * (-999999999.0)

    if block_b is None:
        # Aim for >= min(B, 4) grid steps so BlockSpec pipelining overlaps the
        # activation DMA with compute and the 'parallel' batch axis can be
        # split across v7x's two TensorCores.  At real sizes on v5e/v6e (128
        # MiB VMEM) pass a larger block_b explicitly to amortize the ~0.35 us
        # per-step overhead.
        block_b = max(1, B // min(B, 4))
        while B % block_b:
            block_b -= 1
    assert B % block_b == 0
    grid = (B // block_b,)

    if is_self_attention is None:
        is_self_attention = (Q is K) and (K is V)

    act_spec = pl.BlockSpec((block_b, T, D), lambda i: (i, 0, 0))

    def make_call(single_buffer_consts):
        # Constant-index operands never change across the grid -> single-buffer
        # them (halves their resident VMEM).  Guarded: some Pallas versions do
        # not accept pipeline_mode on pallas_call BlockSpecs.
        ckw = ({"pipeline_mode": pl.Buffered(1)}
               if single_buffer_consts else {})
        wqkv_spec = pl.BlockSpec((D, 3 * D), lambda i: (0, 0), **ckw)
        wo_spec = pl.BlockSpec((D, D), lambda i: (0, 0), **ckw)
        bias_spec = pl.BlockSpec((T, T), lambda i: (0, 0), **ckw)

        if is_self_attention:
            kernel = functools.partial(
                _mha_self_kernel, heads_num=heads_num, inv_scale=inv_scale,
                compute_dtype=compute_dtype, with_att=return_attention)
            in_specs = [act_spec, wqkv_spec, wo_spec, bias_spec]
        else:
            kernel = functools.partial(
                _mha_cross_kernel, heads_num=heads_num, inv_scale=inv_scale,
                compute_dtype=compute_dtype, with_att=return_attention)
            in_specs = [act_spec, act_spec, act_spec, wqkv_spec, wo_spec,
                        bias_spec]

        out_shape = [jax.ShapeDtypeStruct((B, T, D), jnp.float32)]
        out_specs = [pl.BlockSpec((block_b, T, D), lambda i: (i, 0, 0))]
        if return_attention:
            out_shape.append(
                jax.ShapeDtypeStruct((B, heads_num, T, T), jnp.float32))
            out_specs.append(
                pl.BlockSpec((block_b, heads_num, T, T),
                             lambda i: (i, 0, 0, 0)))

        return pl.pallas_call(
            kernel,
            grid=grid,
            in_specs=in_specs,
            out_specs=out_specs,
            out_shape=out_shape,
            scratch_shapes=[pltpu.VMEM((block_b, T, D), compute_dtype)],
            compiler_params=pltpu.CompilerParams(
                dimension_semantics=("parallel",),
                # 48 MiB: far above this kernel's footprint but leaves headroom
                # below v7x's 64 MiB physical VMEM; raise on v5e/v6e (128 MiB)
                # if a larger block_b is used at real sizes.
                vmem_limit_bytes=48 * 1024 * 1024),
        )

    if is_self_attention:
        operands = (Q.astype(compute_dtype), wqkv, wo, bias)
    else:
        operands = (Q.astype(compute_dtype), K.astype(compute_dtype),
                    V.astype(compute_dtype), wqkv, wo, bias)

    try:
        results = make_call(True)(*operands)
    except Exception:
        # Fallback: default double-buffered constants (pipeline_mode rejected).
        results = make_call(False)(*operands)

    if return_attention:
        out, att = results
        return out, att
    (out,) = results
    return out, None


# ----------------------------------------------------------------------------
# Pure-JAX reference (mirrors the PyTorch math, fp32) for correctness checking
# ----------------------------------------------------------------------------

def mha_reference(Q, K, V, mask, params, heads_num, dropout_rate):
    B, T, D = Q.shape
    d_k = D // heads_num
    q = Q @ params["W_Q"]
    k = K @ params["W_K"]
    v = V @ params["W_V"]

    def split(x):
        return x.reshape(B, T, heads_num, d_k).transpose(0, 2, 1, 3)

    qw, kw, vw = split(q), split(k), split(v)
    s = (qw @ jnp.swapaxes(kw, 2, 3)) / math.sqrt(d_k)
    s = jnp.where(mask[None, None] > 0.5, -999999999.0, s)
    att = jax.nn.softmax(s, axis=-1)
    head = att @ vw
    head_cat = jnp.transpose(head, (0, 2, 1, 3)).reshape(B, T, D)
    out = (head_cat @ params["W_O"]) * (1.0 - dropout_rate)
    return out, att


# ----------------------------------------------------------------------------
# Main
# ----------------------------------------------------------------------------

if __name__ == "__main__":
    B, T = 4, 8
    d_model, heads_num = 128, 4
    dropout_rate = 0.1

    key = jax.random.PRNGKey(0)
    kq, kk, kv, kx, kw1, kw2, kw3, kw4 = jax.random.split(key, 8)

    params = {
        "W_Q": jax.random.normal(kw1, (d_model, d_model), jnp.float32) * 0.05,
        "W_K": jax.random.normal(kw2, (d_model, d_model), jnp.float32) * 0.05,
        "W_V": jax.random.normal(kw3, (d_model, d_model), jnp.float32) * 0.05,
        "W_O": jax.random.normal(kw4, (d_model, d_model), jnp.float32) * 0.05,
    }

    # Causal mask: 1.0 = masked (future) position, matching
    # `QK[:, :, mask] = -999999999.0` in the reference.
    mask = jnp.triu(jnp.ones((T, T), jnp.float32), k=1)

    # ---- self-attention path (Q is K is V) -> fused-QKV kernel ---------------
    x = jax.random.normal(kx, (B, T, d_model), jnp.float32)
    out, att = multi_head_attention(params, x, x, x, mask,
                                    heads_num=heads_num,
                                    dropout_rate=dropout_rate)
    out, att = jax.block_until_ready((out, att))

    out_ref, att_ref = mha_reference(x, x, x, mask, params, heads_num,
                                     dropout_rate)
    assert out.shape == (B, T, d_model)
    assert att.shape == (B, heads_num, T, T)
    assert bool(jnp.all(jnp.isfinite(out)))
    assert bool(jnp.allclose(out, out_ref, atol=2e-2, rtol=2e-2)), \
        float(jnp.max(jnp.abs(out - out_ref)))
    assert bool(jnp.allclose(att, att_ref, atol=2e-2, rtol=2e-2))
    # masked (future) positions must carry ~zero attention probability
    assert float(jnp.max(jnp.where(mask[None, None] > 0.5, att, 0.0))) < 1e-6

    # ---- cross-attention path (distinct Q, K, V) ------------------------------
    Qx = jax.random.normal(kq, (B, T, d_model), jnp.float32)
    Kx = jax.random.normal(kk, (B, T, d_model), jnp.float32)
    Vx = jax.random.normal(kv, (B, T, d_model), jnp.float32)
    out2, att2 = multi_head_attention(params, Qx, Kx, Vx, mask,
                                      heads_num=heads_num,
                                      dropout_rate=dropout_rate)
    out2, att2 = jax.block_until_ready((out2, att2))
    out2_ref, att2_ref = mha_reference(Qx, Kx, Vx, mask, params, heads_num,
                                       dropout_rate)
    assert bool(jnp.allclose(out2, out2_ref, atol=2e-2, rtol=2e-2))
    assert bool(jnp.allclose(att2, att2_ref, atol=2e-2, rtol=2e-2))

    # ---- attention-output-skipped path (biggest HBM/VMEM lever at scale) ------
    out3, att3 = multi_head_attention(params, x, x, x, mask,
                                      heads_num=heads_num,
                                      dropout_rate=dropout_rate,
                                      return_attention=False)
    out3 = jax.block_until_ready(out3)
    assert att3 is None
    assert bool(jnp.allclose(out3, out_ref, atol=2e-2, rtol=2e-2))

    print("KERNEL_OK")
</pallas_src>

<mosaic_0001>
module attributes {stable_mosaic.version = 11 : i64} {
  func.func @_mha_self_kernel(%arg0: i32, %arg1: memref<1x8x128xbf16, #tpu.memory_space<vmem>>, %arg2: memref<128x384xbf16, #tpu.memory_space<vmem>>, %arg3: memref<128x128xbf16, #tpu.memory_space<vmem>>, %arg4: memref<8x8xf32, #tpu.memory_space<vmem>>, %arg5: memref<1x8x128xf32, #tpu.memory_space<vmem>>, %arg6: memref<1x4x8x8xf32, #tpu.memory_space<vmem>>, %arg7: memref<1x8x128xbf16, #tpu.memory_space<vmem>>) attributes {dimension_semantics = [#tpu.dimension_semantics<parallel>], iteration_bounds = array<i64: 4>, scalar_prefetch = 0 : i64, scratch_operands = 1 : i64, tpu.core_type = #tpu.core_type<tc>, window_params = [{transform_indices = @transform_0, window_bounds = array<i64: 1, 8, 128>}, {pipeline_mode = #tpu.pipeline_mode<synchronous>, transform_indices = @transform_1, window_bounds = array<i64: 128, 384>}, {pipeline_mode = #tpu.pipeline_mode<synchronous>, transform_indices = @transform_2, window_bounds = array<i64: 128, 128>}, {pipeline_mode = #tpu.pipeline_mode<synchronous>, transform_indices = @transform_3, window_bounds = array<i64: 8, 8>}, {transform_indices = @transform_4, window_bounds = array<i64: 1, 8, 128>}, {transform_indices = @transform_5, window_bounds = array<i64: 1, 4, 8, 8>}]} {
    %c0 = arith.constant 0 : index
    %c0_0 = arith.constant 0 : index
    %c0_1 = arith.constant 0 : index
    %0 = vector.load %arg1[%c0, %c0_0, %c0_1] : memref<1x8x128xbf16, #tpu.memory_space<vmem>>, vector<1x8x128xbf16>
    %1 = vector.shape_cast %0 : vector<1x8x128xbf16> to vector<8x128xbf16>
    %c0_2 = arith.constant 0 : index
    %c0_3 = arith.constant 0 : index
    %2 = vector.load %arg2[%c0_2, %c0_3] : memref<128x384xbf16, #tpu.memory_space<vmem>>, vector<128x384xbf16>
    %cst = arith.constant dense<0.000000e+00> : vector<8x384xf32>
    %3 = tpu.matmul %1, %2, %cst {dimension_numbers = #tpu.dot_dimension_numbers<[1], [0], [0], [1], [0, 0, 1, 1], [], []>} : vector<8x128xbf16>, vector<128x384xbf16>, vector<8x384xf32> -> vector<8x384xf32>
    %4 = arith.truncf %3 : vector<8x384xf32> to vector<8x384xbf16>
    %5 = vector.shape_cast %4 : vector<8x384xbf16> to vector<1x8x384xbf16>
    %c0_4 = arith.constant 0 : index
    %c0_5 = arith.constant 0 : index
    %6 = vector.load %arg4[%c0_4, %c0_5] : memref<8x8xf32, #tpu.memory_space<vmem>>, vector<8x8xf32>
    %7 = vector.shape_cast %6 : vector<8x8xf32> to vector<1x8x8xf32>
    %8 = vector.extract_strided_slice %5 {offsets = [0, 0, 0], sizes = [1, 8, 128], strides = [1, 1, 1]} : vector<1x8x384xbf16> to vector<1x8x128xbf16>
    %9 = vector.extract_strided_slice %5 {offsets = [0, 0, 128], sizes = [1, 8, 128], strides = [1, 1, 1]} : vector<1x8x384xbf16> to vector<1x8x128xbf16>
    %10 = vector.extract_strided_slice %5 {offsets = [0, 0, 256], sizes = [1, 8, 128], strides = [1, 1, 1]} : vector<1x8x384xbf16> to vector<1x8x128xbf16>
    %11 = vector.extract_strided_slice %8 {offsets = [0, 0, 0], sizes = [1, 8, 32], strides = [1, 1, 1]} : vector<1x8x128xbf16> to vector<1x8x32xbf16>
    %12 = vector.extract_strided_slice %9 {offsets = [0, 0, 0], sizes = [1, 8, 32], strides = [1, 1, 1]} : vector<1x8x128xbf16> to vector<1x8x32xbf16>
    "tpu.trace_start"() <{level = 10 : i32, message = "bqd,bkd->bqk"}> : () -> ()
    %cst_6 = arith.constant dense<0.000000e+00> : vector<1x8x8xf32>
    %13 = tpu.matmul %11, %12, %cst_6 {dimension_numbers = #tpu.dot_dimension_numbers<[2], [2], [1], [1], [0, 0, 0, 1, 1, 1], [0], [0]>} : vector<1x8x32xbf16>, vector<1x8x32xbf16>, vector<1x8x8xf32> -> vector<1x8x8xf32>
    "tpu.trace_stop"() : () -> ()
    %cst_7 = arith.constant 0.176776692 : f32
    %14 = vector.broadcast %cst_7 : f32 to vector<1x8x8xf32>
    %15 = arith.mulf %13, %14 : vector<1x8x8xf32>
    %16 = arith.addf %15, %7 : vector<1x8x8xf32>
    %cst_8 = arith.constant dense<0xFF800000> : vector<1x8xf32>
    %17 = vector.multi_reduction <maximumf>, %16, %cst_8 [2] : vector<1x8x8xf32> to vector<1x8xf32>
    %18 = vector.shape_cast %17 : vector<1x8xf32> to vector<1x8x1xf32>
    %19 = vector.broadcast %18 : vector<1x8x1xf32> to vector<1x8x8xf32>
    %20 = arith.subf %16, %19 : vector<1x8x8xf32>
    %21 = math.exp %20 : vector<1x8x8xf32>
    %cst_9 = arith.constant dense<0.000000e+00> : vector<1x8xf32>
    %22 = vector.multi_reduction <add>, %21, %cst_9 [2] : vector<1x8x8xf32> to vector<1x8xf32>
    %23 = vector.shape_cast %22 : vector<1x8xf32> to vector<1x8x1xf32>
    %24 = tpu.reciprocal %23 {approx = true} : vector<1x8x1xf32> -> vector<1x8x1xf32>
    %25 = vector.broadcast %24 : vector<1x8x1xf32> to vector<1x8x8xf32>
    %26 = arith.mulf %21, %25 : vector<1x8x8xf32>
    %c0_10 = arith.constant 0 : index
    %c0_11 = arith.constant 0 : index
    %c0_12 = arith.constant 0 : index
    %c0_13 = arith.constant 0 : index
    %27 = vector.load %arg6[%c0_10, %c0_11, %c0_12, %c0_13] : memref<1x4x8x8xf32, #tpu.memory_space<vmem>>, vector<1x1x8x8xf32>
    %28 = vector.shape_cast %27 : vector<1x1x8x8xf32> to vector<1x8x8xf32>
    %29 = vector.shape_cast %26 : vector<1x8x8xf32> to vector<1x1x8x8xf32>
    tpu.vector_store %arg6[%c0_10, %c0_11, %c0_12, %c0_13], %29 {strides = array<i32>} : memref<1x4x8x8xf32, #tpu.memory_space<vmem>>, vector<1x1x8x8xf32>,
    %30 = arith.truncf %26 : vector<1x8x8xf32> to vector<1x8x8xbf16>
    %31 = vector.extract_strided_slice %10 {offsets = [0, 0, 0], sizes = [1, 8, 32], strides = [1, 1, 1]} : vector<1x8x128xbf16> to vector<1x8x32xbf16>
    "tpu.trace_start"() <{level = 10 : i32, message = "bqk,bkd->bqd"}> : () -> ()
    %cst_14 = arith.constant dense<0.000000e+00> : vector<1x8x32xf32>
    %32 = tpu.matmul %30, %31, %cst_14 {dimension_numbers = #tpu.dot_dimension_numbers<[2], [1], [1], [2], [0, 0, 0, 1, 1, 2], [0], [0]>} : vector<1x8x8xbf16>, vector<1x8x32xbf16>, vector<1x8x32xf32> -> vector<1x8x32xf32>
    "tpu.trace_stop"() : () -> ()
    %33 = arith.truncf %32 : vector<1x8x32xf32> to vector<1x8x32xbf16>
    %c0_15 = arith.constant 0 : index
    %c0_16 = arith.constant 0 : index
    %c0_17 = arith.constant 0 : index
    %34 = vector.load %arg7[%c0_15, %c0_16, %c0_17] : memref<1x8x128xbf16, #tpu.memory_space<vmem>>, vector<1x8x32xbf16>
    tpu.vector_store %arg7[%c0_15, %c0_16, %c0_17], %33 {strides = array<i32>} : memref<1x8x128xbf16, #tpu.memory_space<vmem>>, vector<1x8x32xbf16>,
    %35 = vector.extract_strided_slice %8 {offsets = [0, 0, 32], sizes = [1, 8, 32], strides = [1, 1, 1]} : vector<1x8x128xbf16> to vector<1x8x32xbf16>
    %36 = vector.extract_strided_slice %9 {offsets = [0, 0, 32], sizes = [1, 8, 32], strides = [1, 1, 1]} : vector<1x8x128xbf16> to vector<1x8x32xbf16>
    "tpu.trace_start"() <{level = 10 : i32, message = "bqd,bkd->bqk"}> : () -> ()
    %cst_18 = arith.constant dense<0.000000e+00> : vector<1x8x8xf32>
    %37 = tpu.matmul %35, %36, %cst_18 {dimension_numbers = #tpu.dot_dimension_numbers<[2], [2], [1], [1], [0, 0, 0, 1, 1, 1], [0], [0]>} : vector<1x8x32xbf16>, vector<1x8x32xbf16>, vector<1x8x8xf32> -> vector<1x8x8xf32>
    "tpu.trace_stop"() : () -> ()
    %cst_19 = arith.constant 0.176776692 : f32
    %38 = vector.broadcast %cst_19 : f32 to vector<1x8x8xf32>
    %39 = arith.mulf %37, %38 : vector<1x8x8xf32>
    %40 = arith.addf %39, %7 : vector<1x8x8xf32>
    %cst_20 = arith.constant dense<0xFF800000> : vector<1x8xf32>
    %41 = vector.multi_reduction <maximumf>, %40, %cst_20 [2] : vector<1x8x8xf32> to vector<1x8xf32>
    %42 = vector.shape_cast %41 : vector<1x8xf32> to vector<1x8x1xf32>
    %43 = vector.broadcast %42 : vector<1x8x1xf32> to vector<1x8x8xf32>
    %44 = arith.subf %40, %43 : vector<1x8x8xf32>
    %45 = math.exp %44 : vector<1x8x8xf32>
    %cst_21 = arith.constant dense<0.000000e+00> : vector<1x8xf32>
    %46 = vector.multi_reduction <add>, %45, %cst_21 [2] : vector<1x8x8xf32> to vector<1x8xf32>
    %47 = vector.shape_cast %46 : vector<1x8xf32> to vector<1x8x1xf32>
    %48 = tpu.reciprocal %47 {approx = true} : vector<1x8x1xf32> -> vector<1x8x1xf32>
    %49 = vector.broadcast %48 : vector<1x8x1xf32> to vector<1x8x8xf32>
    %50 = arith.mulf %45, %49 : vector<1x8x8xf32>
    %c0_22 = arith.constant 0 : index
    %c1 = arith.constant 1 : index
    %c0_23 = arith.constant 0 : index
    %c0_24 = arith.constant 0 : index
    %51 = vector.load %arg6[%c0_22, %c1, %c0_23, %c0_24] : memref<1x4x8x8xf32, #tpu.memory_space<vmem>>, vector<1x1x8x8xf32>
    %52 = vector.shape_cast %51 : vector<1x1x8x8xf32> to vector<1x8x8xf32>
    %53 = vector.shape_cast %50 : vector<1x8x8xf32> to vector<1x1x8x8xf32>
    tpu.vector_store %arg6[%c0_22, %c1, %c0_23, %c0_24], %53 {strides = array<i32>} : memref<1x4x8x8xf32, #tpu.memory_space<vmem>>, vector<1x1x8x8xf32>,
    %54 = arith.truncf %50 : vector<1x8x8xf32> to vector<1x8x8xbf16>
    %55 = vector.extract_strided_slice %10 {offsets = [0, 0, 32], sizes = [1, 8, 32], strides = [1, 1, 1]} : vector<1x8x128xbf16> to vector<1x8x32xbf16>
    "tpu.trace_start"() <{level = 10 : i32, message = "bqk,bkd->bqd"}> : () -> ()
    %cst_25 = arith.constant dense<0.000000e+00> : vector<1x8x32xf32>
    %56 = tpu.matmul %54, %55, %cst_25 {dimension_numbers = #tpu.dot_dimension_numbers<[2], [1], [1], [2], [0, 0, 0, 1, 1, 2], [0], [0]>} : vector<1x8x8xbf16>, vector<1x8x32xbf16>, vector<1x8x32xf32> -> vector<1x8x32xf32>
    "tpu.trace_stop"() : () -> ()
    %57 = arith.truncf %56 : vector<1x8x32xf32> to vector<1x8x32xbf16>
    %c0_26 = arith.constant 0 : index
    %c0_27 = arith.constant 0 : index
    %c32 = arith.constant 32 : index
    %58 = vector.load %arg7[%c0_26, %c0_27, %c32] : memref<1x8x128xbf16, #tpu.memory_space<vmem>>, vector<1x8x32xbf16>
    tpu.vector_store %arg7[%c0_26, %c0_27, %c32], %57 {strides = array<i32>} : memref<1x8x128xbf16, #tpu.memory_space<vmem>>, vector<1x8x32xbf16>,
    %59 = vector.extract_strided_slice %8 {offsets = [0, 0, 64], sizes = [1, 8, 32], strides = [1, 1, 1]} : vector<1x8x128xbf16> to vector<1x8x32xbf16>
    %60 = vector.extract_strided_slice %9 {offsets = [0, 0, 64], sizes = [1, 8, 32], strides = [1, 1, 1]} : vector<1x8x128xbf16> to vector<1x8x32xbf16>
    "tpu.trace_start"() <{level = 10 : i32, message = "bqd,bkd->bqk"}> : () -> ()
    %cst_28 = arith.constant dense<0.000000e+00> : vector<1x8x8xf32>
    %61 = tpu.matmul %59, %60, %cst_28 {dimension_numbers = #tpu.dot_dimension_numbers<[2], [2], [1], [1], [0, 0, 0, 1, 1, 1], [0], [0]>} : vector<1x8x32xbf16>, vector<1x8x32xbf16>, vector<1x8x8xf32> -> vector<1x8x8xf32>
    "tpu.trace_stop"() : () -> ()
    %cst_29 = arith.constant 0.176776692 : f32
    %62 = vector.broadcast %cst_29 : f32 to vector<1x8x8xf32>
    %63 = arith.mulf %61, %62 : vector<1x8x8xf32>
    %64 = arith.addf %63, %7 : vector<1x8x8xf32>
    %cst_30 = arith.constant dense<0xFF800000> : vector<1x8xf32>
    %65 = vector.multi_reduction <maximumf>, %64, %cst_30 [2] : vector<1x8x8xf32> to vector<1x8xf32>
    %66 = vector.shape_cast %65 : vector<1x8xf32> to vector<1x8x1xf32>
    %67 = vector.broadcast %66 : vector<1x8x1xf32> to vector<1x8x8xf32>
    %68 = arith.subf %64, %67 : vector<1x8x8xf32>
    %69 = math.exp %68 : vector<1x8x8xf32>
    %cst_31 = arith.constant dense<0.000000e+00> : vector<1x8xf32>
    %70 = vector.multi_reduction <add>, %69, %cst_31 [2] : vector<1x8x8xf32> to vector<1x8xf32>
    %71 = vector.shape_cast %70 : vector<1x8xf32> to vector<1x8x1xf32>
    %72 = tpu.reciprocal %71 {approx = true} : vector<1x8x1xf32> -> vector<1x8x1xf32>
    %73 = vector.broadcast %72 : vector<1x8x1xf32> to vector<1x8x8xf32>
    %74 = arith.mulf %69, %73 : vector<1x8x8xf32>
    %c0_32 = arith.constant 0 : index
    %c2 = arith.constant 2 : index
    %c0_33 = arith.constant 0 : index
    %c0_34 = arith.constant 0 : index
    %75 = vector.load %arg6[%c0_32, %c2, %c0_33, %c0_34] : memref<1x4x8x8xf32, #tpu.memory_space<vmem>>, vector<1x1x8x8xf32>
    %76 = vector.shape_cast %75 : vector<1x1x8x8xf32> to vector<1x8x8xf32>
    %77 = vector.shape_cast %74 : vector<1x8x8xf32> to vector<1x1x8x8xf32>
    tpu.vector_store %arg6[%c0_32, %c2, %c0_33, %c0_34], %77 {strides = array<i32>} : memref<1x4x8x8xf32, #tpu.memory_space<vmem>>, vector<1x1x8x8xf32>,
    %78 = arith.truncf %74 : vector<1x8x8xf32> to vector<1x8x8xbf16>
    %79 = vector.extract_strided_slice %10 {offsets = [0, 0, 64], sizes = [1, 8, 32], strides = [1, 1, 1]} : vector<1x8x128xbf16> to vector<1x8x32xbf16>
    "tpu.trace_start"() <{level = 10 : i32, message = "bqk,bkd->bqd"}> : () -> ()
    %cst_35 = arith.constant dense<0.000000e+00> : vector<1x8x32xf32>
    %80 = tpu.matmul %78, %79, %cst_35 {dimension_numbers = #tpu.dot_dimension_numbers<[2], [1], [1], [2], [0, 0, 0, 1, 1, 2], [0], [0]>} : vector<1x8x8xbf16>, vector<1x8x32xbf16>, vector<1x8x32xf32> -> vector<1x8x32xf32>
    "tpu.trace_stop"() : () -> ()
    %81 = arith.truncf %80 : vector<1x8x32xf32> to vector<1x8x32xbf16>
    %c0_36 = arith.constant 0 : index
    %c0_37 = arith.constant 0 : index
    %c64 = arith.constant 64 : index
    %82 = vector.load %arg7[%c0_36, %c0_37, %c64] : memref<1x8x128xbf16, #tpu.memory_space<vmem>>, vector<1x8x32xbf16>
    tpu.vector_store %arg7[%c0_36, %c0_37, %c64], %81 {strides = array<i32>} : memref<1x8x128xbf16, #tpu.memory_space<vmem>>, vector<1x8x32xbf16>,
    %83 = vector.extract_strided_slice %8 {offsets = [0, 0, 96], sizes = [1, 8, 32], strides = [1, 1, 1]} : vector<1x8x128xbf16> to vector<1x8x32xbf16>
    %84 = vector.extract_strided_slice %9 {offsets = [0, 0, 96], sizes = [1, 8, 32], strides = [1, 1, 1]} : vector<1x8x128xbf16> to vector<1x8x32xbf16>
    "tpu.trace_start"() <{level = 10 : i32, message = "bqd,bkd->bqk"}> : () -> ()
    %cst_38 = arith.constant dense<0.000000e+00> : vector<1x8x8xf32>
    %85 = tpu.matmul %83, %84, %cst_38 {dimension_numbers = #tpu.dot_dimension_numbers<[2], [2], [1], [1], [0, 0, 0, 1, 1, 1], [0], [0]>} : vector<1x8x32xbf16>, vector<1x8x32xbf16>, vector<1x8x8xf32> -> vector<1x8x8xf32>
    "tpu.trace_stop"() : () -> ()
    %cst_39 = arith.constant 0.176776692 : f32
    %86 = vector.broadcast %cst_39 : f32 to vector<1x8x8xf32>
    %87 = arith.mulf %85, %86 : vector<1x8x8xf32>
    %88 = arith.addf %87, %7 : vector<1x8x8xf32>
    %cst_40 = arith.constant dense<0xFF800000> : vector<1x8xf32>
    %89 = vector.multi_reduction <maximumf>, %88, %cst_40 [2] : vector<1x8x8xf32> to vector<1x8xf32>
    %90 = vector.shape_cast %89 : vector<1x8xf32> to vector<1x8x1xf32>
    %91 = vector.broadcast %90 : vector<1x8x1xf32> to vector<1x8x8xf32>
    %92 = arith.subf %88, %91 : vector<1x8x8xf32>
    %93 = math.exp %92 : vector<1x8x8xf32>
    %cst_41 = arith.constant dense<0.000000e+00> : vector<1x8xf32>
    %94 = vector.multi_reduction <add>, %93, %cst_41 [2] : vector<1x8x8xf32> to vector<1x8xf32>
    %95 = vector.shape_cast %94 : vector<1x8xf32> to vector<1x8x1xf32>
    %96 = tpu.reciprocal %95 {approx = true} : vector<1x8x1xf32> -> vector<1x8x1xf32>
    %97 = vector.broadcast %96 : vector<1x8x1xf32> to vector<1x8x8xf32>
    %98 = arith.mulf %93, %97 : vector<1x8x8xf32>
    %c0_42 = arith.constant 0 : index
    %c3 = arith.constant 3 : index
    %c0_43 = arith.constant 0 : index
    %c0_44 = arith.constant 0 : index
    %99 = vector.load %arg6[%c0_42, %c3, %c0_43, %c0_44] : memref<1x4x8x8xf32, #tpu.memory_space<vmem>>, vector<1x1x8x8xf32>
    %100 = vector.shape_cast %99 : vector<1x1x8x8xf32> to vector<1x8x8xf32>
    %101 = vector.shape_cast %98 : vector<1x8x8xf32> to vector<1x1x8x8xf32>
    tpu.vector_store %arg6[%c0_42, %c3, %c0_43, %c0_44], %101 {strides = array<i32>} : memref<1x4x8x8xf32, #tpu.memory_space<vmem>>, vector<1x1x8x8xf32>,
    %102 = arith.truncf %98 : vector<1x8x8xf32> to vector<1x8x8xbf16>
    %103 = vector.extract_strided_slice %10 {offsets = [0, 0, 96], sizes = [1, 8, 32], strides = [1, 1, 1]} : vector<1x8x128xbf16> to vector<1x8x32xbf16>
    "tpu.trace_start"() <{level = 10 : i32, message = "bqk,bkd->bqd"}> : () -> ()
    %cst_45 = arith.constant dense<0.000000e+00> : vector<1x8x32xf32>
    %104 = tpu.matmul %102, %103, %cst_45 {dimension_numbers = #tpu.dot_dimension_numbers<[2], [1], [1], [2], [0, 0, 0, 1, 1, 2], [0], [0]>} : vector<1x8x8xbf16>, vector<1x8x32xbf16>, vector<1x8x32xf32> -> vector<1x8x32xf32>
    "tpu.trace_stop"() : () -> ()
    %105 = arith.truncf %104 : vector<1x8x32xf32> to vector<1x8x32xbf16>
    %c0_46 = arith.constant 0 : index
    %c0_47 = arith.constant 0 : index
    %c96 = arith.constant 96 : index
    %106 = vector.load %arg7[%c0_46, %c0_47, %c96] : memref<1x8x128xbf16, #tpu.memory_space<vmem>>, vector<1x8x32xbf16>
    tpu.vector_store %arg7[%c0_46, %c0_47, %c96], %105 {strides = array<i32>} : memref<1x8x128xbf16, #tpu.memory_space<vmem>>, vector<1x8x32xbf16>,
    %c0_48 = arith.constant 0 : index
    %c0_49 = arith.constant 0 : index
    %c0_50 = arith.constant 0 : index
    %107 = vector.load %arg7[%c0_48, %c0_49, %c0_50] : memref<1x8x128xbf16, #tpu.memory_space<vmem>>, vector<1x8x128xbf16>
    %108 = vector.shape_cast %107 : vector<1x8x128xbf16> to vector<8x128xbf16>
    %c0_51 = arith.constant 0 : index
    %c0_52 = arith.constant 0 : index
    %109 = vector.load %arg3[%c0_51, %c0_52] : memref<128x128xbf16, #tpu.memory_space<vmem>>, vector<128x128xbf16>
    %cst_53 = arith.constant dense<0.000000e+00> : vector<8x128xf32>
    %110 = tpu.matmul %108, %109, %cst_53 {dimension_numbers = #tpu.dot_dimension_numbers<[1], [0], [0], [1], [0, 0, 1, 1], [], []>} : vector<8x128xbf16>, vector<128x128xbf16>, vector<8x128xf32> -> vector<8x128xf32>
    %111 = vector.shape_cast %110 : vector<8x128xf32> to vector<1x8x128xf32>
    %c0_54 = arith.constant 0 : index
    %c0_55 = arith.constant 0 : index
    %c0_56 = arith.constant 0 : index
    %112 = vector.load %arg5[%c0_54, %c0_55, %c0_56] : memref<1x8x128xf32, #tpu.memory_space<vmem>>, vector<1x8x128xf32>
    tpu.vector_store %arg5[%c0_54, %c0_55, %c0_56], %111 {strides = array<i32>} : memref<1x8x128xf32, #tpu.memory_space<vmem>>, vector<1x8x128xf32>,
    return
  }
  func.func @transform_0(%arg0: i32) -> (i32, i32, i32) {
    %c0_i32 = arith.constant 0 : i32
    %c0_i32_0 = arith.constant 0 : i32
    %c0_i32_1 = arith.constant 0 : i32
    return %arg0, %c0_i32, %c0_i32_0 : i32, i32, i32
  }
  func.func @transform_1(%arg0: i32) -> (i32, i32) {
    %c0_i32 = arith.constant 0 : i32
    %c0_i32_0 = arith.constant 0 : i32
    %c0_i32_1 = arith.constant 0 : i32
    return %c0_i32, %c0_i32_0 : i32, i32
  }
  func.func @transform_2(%arg0: i32) -> (i32, i32) {
    %c0_i32 = arith.constant 0 : i32
    %c0_i32_0 = arith.constant 0 : i32
    %c0_i32_1 = arith.constant 0 : i32
    return %c0_i32, %c0_i32_0 : i32, i32
  }
  func.func @transform_3(%arg0: i32) -> (i32, i32) {
    %c0_i32 = arith.constant 0 : i32
    %c0_i32_0 = arith.constant 0 : i32
    %c0_i32_1 = arith.constant 0 : i32
    return %c0_i32, %c0_i32_0 : i32, i32
  }
  func.func @transform_4(%arg0: i32) -> (i32, i32, i32) {
    %c0_i32 = arith.constant 0 : i32
    %c0_i32_0 = arith.constant 0 : i32
    %c0_i32_1 = arith.constant 0 : i32
    return %arg0, %c0_i32, %c0_i32_0 : i32, i32, i32
  }
  func.func @transform_5(%arg0: i32) -> (i32, i32, i32, i32) {
    %c0_i32 = arith.constant 0 : i32
    %c0_i32_0 = arith.constant 0 : i32
    %c0_i32_1 = arith.constant 0 : i32
    %c0_i32_2 = arith.constant 0 : i32
    return %arg0, %c0_i32, %c0_i32_0, %c0_i32_1 : i32, i32, i32, i32
  }
}

module attributes {stable_mosaic.version = 11 : i64} {
  func.func @_mha_self_kernel(%arg0: i32, %arg1: memref<1x8x128xbf16, #tpu.memory_space<vmem>>, %arg2: memref<128x384xbf16, #tpu.memory_space<vmem>>, %arg3: memref<128x128xbf16, #tpu.memory_space<vmem>>, %arg4: memref<8x8xf32, #tpu.memory_space<vmem>>, %arg5: memref<1x8x128xf32, #tpu.memory_space<vmem>>, %arg6: memref<1x4x8x8xf32, #tpu.memory_space<vmem>>, %arg7: memref<1x8x128xbf16, #tpu.memory_space<vmem>>) attributes {dimension_semantics = [#tpu.dimension_semantics<parallel>], iteration_bounds = array<i64: 4>, scalar_prefetch = 0 : i64, scratch_operands = 1 : i64, tpu.core_type = #tpu.core_type<tc>, window_params = [{transform_indices = @transform_0, window_bounds = array<i64: 1, 8, 128>}, {pipeline_mode = #tpu.pipeline_mode<synchronous>, transform_indices = @transform_1, window_bounds = array<i64: 128, 384>}, {pipeline_mode = #tpu.pipeline_mode<synchronous>, transform_indices = @transform_2, window_bounds = array<i64: 128, 128>}, {pipeline_mode = #tpu.pipeline_mode<synchronous>, transform_indices = @transform_3, window_bounds = array<i64: 8, 8>}, {transform_indices = @transform_4, window_bounds = array<i64: 1, 8, 128>}, {transform_indices = @transform_5, window_bounds = array<i64: 1, 4, 8, 8>}]} {
    %c0 = arith.constant 0 : index
    %c0_0 = arith.constant 0 : index
    %c0_1 = arith.constant 0 : index
    %0 = vector.load %arg1[%c0, %c0_0, %c0_1] : memref<1x8x128xbf16, #tpu.memory_space<vmem>>, vector<1x8x128xbf16>
    %1 = vector.shape_cast %0 : vector<1x8x128xbf16> to vector<8x128xbf16>
    %c0_2 = arith.constant 0 : index
    %c0_3 = arith.constant 0 : index
    %2 = vector.load %arg2[%c0_2, %c0_3] : memref<128x384xbf16, #tpu.memory_space<vmem>>, vector<128x384xbf16>
    %cst = arith.constant dense<0.000000e+00> : vector<8x384xf32>
    %3 = tpu.matmul %1, %2, %cst {dimension_numbers = #tpu.dot_dimension_numbers<[1], [0], [0], [1], [0, 0, 1, 1], [], []>} : vector<8x128xbf16>, vector<128x384xbf16>, vector<8x384xf32> -> vector<8x384xf32>
    %4 = arith.truncf %3 : vector<8x384xf32> to vector<8x384xbf16>
    %5 = vector.shape_cast %4 : vector<8x384xbf16> to vector<1x8x384xbf16>
    %c0_4 = arith.constant 0 : index
    %c0_5 = arith.constant 0 : index
    %6 = vector.load %arg4[%c0_4, %c0_5] : memref<8x8xf32, #tpu.memory_space<vmem>>, vector<8x8xf32>
    %7 = vector.shape_cast %6 : vector<8x8xf32> to vector<1x8x8xf32>
    %8 = vector.extract_strided_slice %5 {offsets = [0, 0, 0], sizes = [1, 8, 128], strides = [1, 1, 1]} : vector<1x8x384xbf16> to vector<1x8x128xbf16>
    %9 = vector.extract_strided_slice %5 {offsets = [0, 0, 128], sizes = [1, 8, 128], strides = [1, 1, 1]} : vector<1x8x384xbf16> to vector<1x8x128xbf16>
    %10 = vector.extract_strided_slice %5 {offsets = [0, 0, 256], sizes = [1, 8, 128], strides = [1, 1, 1]} : vector<1x8x384xbf16> to vector<1x8x128xbf16>
    %11 = vector.extract_strided_slice %8 {offsets = [0, 0, 0], sizes = [1, 8, 32], strides = [1, 1, 1]} : vector<1x8x128xbf16> to vector<1x8x32xbf16>
    %12 = vector.extract_strided_slice %9 {offsets = [0, 0, 0], sizes = [1, 8, 32], strides = [1, 1, 1]} : vector<1x8x128xbf16> to vector<1x8x32xbf16>
    "tpu.trace_start"() <{level = 10 : i32, message = "bqd,bkd->bqk"}> : () -> ()
    %cst_6 = arith.constant dense<0.000000e+00> : vector<1x8x8xf32>
    %13 = tpu.matmul %11, %12, %cst_6 {dimension_numbers = #tpu.dot_dimension_numbers<[2], [2], [1], [1], [0, 0, 0, 1, 1, 1], [0], [0]>} : vector<1x8x32xbf16>, vector<1x8x32xbf16>, vector<1x8x8xf32> -> vector<1x8x8xf32>
    "tpu.trace_stop"() : () -> ()
    %cst_7 = arith.constant 0.176776692 : f32
    %14 = vector.broadcast %cst_7 : f32 to vector<1x8x8xf32>
    %15 = arith.mulf %13, %14 : vector<1x8x8xf32>
    %16 = arith.addf %15, %7 : vector<1x8x8xf32>
    %cst_8 = arith.constant dense<0xFF800000> : vector<1x8xf32>
    %17 = vector.multi_reduction <maximumf>, %16, %cst_8 [2] : vector<1x8x8xf32> to vector<1x8xf32>
    %18 = vector.shape_cast %17 : vector<1x8xf32> to vector<1x8x1xf32>
    %19 = vector.broadcast %18 : vector<1x8x1xf32> to vector<1x8x8xf32>
    %20 = arith.subf %16, %19 : vector<1x8x8xf32>
    %21 = math.exp %20 : vector<1x8x8xf32>
    %cst_9 = arith.constant dense<0.000000e+00> : vector<1x8xf32>
    %22 = vector.multi_reduction <add>, %21, %cst_9 [2] : vector<1x8x8xf32> to vector<1x8xf32>
    %23 = vector.shape_cast %22 : vector<1x8xf32> to vector<1x8x1xf32>
    %24 = tpu.reciprocal %23 {approx = true} : vector<1x8x1xf32> -> vector<1x8x1xf32>
    %25 = vector.broadcast %24 : vector<1x8x1xf32> to vector<1x8x8xf32>
    %26 = arith.mulf %21, %25 : vector<1x8x8xf32>
    %c0_10 = arith.constant 0 : index
    %c0_11 = arith.constant 0 : index
    %c0_12 = arith.constant 0 : index
    %c0_13 = arith.constant 0 : index
    %27 = vector.load %arg6[%c0_10, %c0_11, %c0_12, %c0_13] : memref<1x4x8x8xf32, #tpu.memory_space<vmem>>, vector<1x1x8x8xf32>
    %28 = vector.shape_cast %27 : vector<1x1x8x8xf32> to vector<1x8x8xf32>
    %29 = vector.shape_cast %26 : vector<1x8x8xf32> to vector<1x1x8x8xf32>
    tpu.vector_store %arg6[%c0_10, %c0_11, %c0_12, %c0_13], %29 {strides = array<i32>} : memref<1x4x8x8xf32, #tpu.memory_space<vmem>>, vector<1x1x8x8xf32>,
    %30 = arith.truncf %26 : vector<1x8x8xf32> to vector<1x8x8xbf16>
    %31 = vector.extract_strided_slice %10 {offsets = [0, 0, 0], sizes = [1, 8, 32], strides = [1, 1, 1]} : vector<1x8x128xbf16> to vector<1x8x32xbf16>
    "tpu.trace_start"() <{level = 10 : i32, message = "bqk,bkd->bqd"}> : () -> ()
    %cst_14 = arith.constant dense<0.000000e+00> : vector<1x8x32xf32>
    %32 = tpu.matmul %30, %31, %cst_14 {dimension_numbers = #tpu.dot_dimension_numbers<[2], [1], [1], [2], [0, 0, 0, 1, 1, 2], [0], [0]>} : vector<1x8x8xbf16>, vector<1x8x32xbf16>, vector<1x8x32xf32> -> vector<1x8x32xf32>
    "tpu.trace_stop"() : () -> ()
    %33 = arith.truncf %32 : vector<1x8x32xf32> to vector<1x8x32xbf16>
    %c0_15 = arith.constant 0 : index
    %c0_16 = arith.constant 0 : index
    %c0_17 = arith.constant 0 : index
    %34 = vector.load %arg7[%c0_15, %c0_16, %c0_17] : memref<1x8x128xbf16, #tpu.memory_space<vmem>>, vector<1x8x32xbf16>
    tpu.vector_store %arg7[%c0_15, %c0_16, %c0_17], %33 {strides = array<i32>} : memref<1x8x128xbf16, #tpu.memory_space<vmem>>, vector<1x8x32xbf16>,
    %35 = vector.extract_strided_slice %8 {offsets = [0, 0, 32], sizes = [1, 8, 32], strides = [1, 1, 1]} : vector<1x8x128xbf16> to vector<1x8x32xbf16>
    %36 = vector.extract_strided_slice %9 {offsets = [0, 0, 32], sizes = [1, 8, 32], strides = [1, 1, 1]} : vector<1x8x128xbf16> to vector<1x8x32xbf16>
    "tpu.trace_start"() <{level = 10 : i32, message = "bqd,bkd->bqk"}> : () -> ()
    %cst_18 = arith.constant dense<0.000000e+00> : vector<1x8x8xf32>
    %37 = tpu.matmul %35, %36, %cst_18 {dimension_numbers = #tpu.dot_dimension_numbers<[2], [2], [1], [1], [0, 0, 0, 1, 1, 1], [0], [0]>} : vector<1x8x32xbf16>, vector<1x8x32xbf16>, vector<1x8x8xf32> -> vector<1x8x8xf32>
    "tpu.trace_stop"() : () -> ()
    %cst_19 = arith.constant 0.176776692 : f32
    %38 = vector.broadcast %cst_19 : f32 to vector<1x8x8xf32>
    %39 = arith.mulf %37, %38 : vector<1x8x8xf32>
    %40 = arith.addf %39, %7 : vector<1x8x8xf32>
    %cst_20 = arith.constant dense<0xFF800000> : vector<1x8xf32>
    %41 = vector.multi_reduction <maximumf>, %40, %cst_20 [2] : vector<1x8x8xf32> to vector<1x8xf32>
    %42 = vector.shape_cast %41 : vector<1x8xf32> to vector<1x8x1xf32>
    %43 = vector.broadcast %42 : vector<1x8x1xf32> to vector<1x8x8xf32>
    %44 = arith.subf %40, %43 : vector<1x8x8xf32>
    %45 = math.exp %44 : vector<1x8x8xf32>
    %cst_21 = arith.constant dense<0.000000e+00> : vector<1x8xf32>
    %46 = vector.multi_reduction <add>, %45, %cst_21 [2] : vector<1x8x8xf32> to vector<1x8xf32>
    %47 = vector.shape_cast %46 : vector<1x8xf32> to vector<1x8x1xf32>
    %48 = tpu.reciprocal %47 {approx = true} : vector<1x8x1xf32> -> vector<1x8x1xf32>
    %49 = vector.broadcast %48 : vector<1x8x1xf32> to vector<1x8x8xf32>
    %50 = arith.mulf %45, %49 : vector<1x8x8xf32>
    %c0_22 = arith.constant 0 : index
    %c1 = arith.constant 1 : index
    %c0_23 = arith.constant 0 : index
    %c0_24 = arith.constant 0 : index
    %51 = vector.load %arg6[%c0_22, %c1, %c0_23, %c0_24] : memref<1x4x8x8xf32, #tpu.memory_space<vmem>>, vector<1x1x8x8xf32>
    %52 = vector.shape_cast %51 : vector<1x1x8x8xf32> to vector<1x8x8xf32>
    %53 = vector.shape_cast %50 : vector<1x8x8xf32> to vector<1x1x8x8xf32>
    tpu.vector_store %arg6[%c0_22, %c1, %c0_23, %c0_24], %53 {strides = array<i32>} : memref<1x4x8x8xf32, #tpu.memory_space<vmem>>, vector<1x1x8x8xf32>,
    %54 = arith.truncf %50 : vector<1x8x8xf32> to vector<1x8x8xbf16>
    %55 = vector.extract_strided_slice %10 {offsets = [0, 0, 32], sizes = [1, 8, 32], strides = [1, 1, 1]} : vector<1x8x128xbf16> to vector<1x8x32xbf16>
    "tpu.trace_start"() <{level = 10 : i32, message = "bqk,bkd->bqd"}> : () -> ()
    %cst_25 = arith.constant dense<0.000000e+00> : vector<1x8x32xf32>
    %56 = tpu.matmul %54, %55, %cst_25 {dimension_numbers = #tpu.dot_dimension_numbers<[2], [1], [1], [2], [0, 0, 0, 1, 1, 2], [0], [0]>} : vector<1x8x8xbf16>, vector<1x8x32xbf16>, vector<1x8x32xf32> -> vector<1x8x32xf32>
    "tpu.trace_stop"() : () -> ()
    %57 = arith.truncf %56 : vector<1x8x32xf32> to vector<1x8x32xbf16>
    %c0_26 = arith.constant 0 : index
    %c0_27 = arith.constant 0 : index
    %c32 = arith.constant 32 : index
    %58 = vector.load %arg7[%c0_26, %c0_27, %c32] : memref<1x8x128xbf16, #tpu.memory_space<vmem>>, vector<1x8x32xbf16>
    tpu.vector_store %arg7[%c0_26, %c0_27, %c32], %57 {strides = array<i32>} : memref<1x8x128xbf16, #tpu.memory_space<vmem>>, vector<1x8x32xbf16>,
    %59 = vector.extract_strided_slice %8 {offsets = [0, 0, 64], sizes = [1, 8, 32], strides = [1, 1, 1]} : vector<1x8x128xbf16> to vector<1x8x32xbf16>
    %60 = vector.extract_strided_slice %9 {offsets = [0, 0, 64], sizes = [1, 8, 32], strides = [1, 1, 1]} : vector<1x8x128xbf16> to vector<1x8x32xbf16>
    "tpu.trace_start"() <{level = 10 : i32, message = "bqd,bkd->bqk"}> : () -> ()
    %cst_28 = arith.constant dense<0.000000e+00> : vector<1x8x8xf32>
    %61 = tpu.matmul %59, %60, %cst_28 {dimension_numbers = #tpu.dot_dimension_numbers<[2], [2], [1], [1], [0, 0, 0, 1, 1, 1], [0], [0]>} : vector<1x8x32xbf16>, vector<1x8x32xbf16>, vector<1x8x8xf32> -> vector<1x8x8xf32>
    "tpu.trace_stop"() : () -> ()
    %cst_29 = arith.constant 0.176776692 : f32
    %62 = vector.broadcast %cst_29 : f32 to vector<1x8x8xf32>
    %63 = arith.mulf %61, %62 : vector<1x8x8xf32>
    %64 = arith.addf %63, %7 : vector<1x8x8xf32>
    %cst_30 = arith.constant dense<0xFF800000> : vector<1x8xf32>
    %65 = vector.multi_reduction <maximumf>, %64, %cst_30 [2] : vector<1x8x8xf32> to vector<1x8xf32>
    %66 = vector.shape_cast %65 : vector<1x8xf32> to vector<1x8x1xf32>
    %67 = vector.broadcast %66 : vector<1x8x1xf32> to vector<1x8x8xf32>
    %68 = arith.subf %64, %67 : vector<1x8x8xf32>
    %69 = math.exp %68 : vector<1x8x8xf32>
    %cst_31 = arith.constant dense<0.000000e+00> : vector<1x8xf32>
    %70 = vector.multi_reduction <add>, %69, %cst_31 [2] : vector<1x8x8xf32> to vector<1x8xf32>
    %71 = vector.shape_cast %70 : vector<1x8xf32> to vector<1x8x1xf32>
    %72 = tpu.reciprocal %71 {approx = true} : vector<1x8x1xf32> -> vector<1x8x1xf32>
    %73 = vector.broadcast %72 : vector<1x8x1xf32> to vector<1x8x8xf32>
    %74 = arith.mulf %69, %73 : vector<1x8x8xf32>
    %c0_32 = arith.constant 0 : index
    %c2 = arith.constant 2 : index
    %c0_33 = arith.constant 0 : index
    %c0_34 = arith.constant 0 : index
    %75 = vector.load %arg6[%c0_32, %c2, %c0_33, %c0_34] : memref<1x4x8x8xf32, #tpu.memory_space<vmem>>, vector<1x1x8x8xf32>
    %76 = vector.shape_cast %75 : vector<1x1x8x8xf32> to vector<1x8x8xf32>
    %77 = vector.shape_cast %74 : vector<1x8x8xf32> to vector<1x1x8x8xf32>
    tpu.vector_store %arg6[%c0_32, %c2, %c0_33, %c0_34], %77 {strides = array<i32>} : memref<1x4x8x8xf32, #tpu.memory_space<vmem>>, vector<1x1x8x8xf32>,
    %78 = arith.truncf %74 : vector<1x8x8xf32> to vector<1x8x8xbf16>
    %79 = vector.extract_strided_slice %10 {offsets = [0, 0, 64], sizes = [1, 8, 32], strides = [1, 1, 1]} : vector<1x8x128xbf16> to vector<1x8x32xbf16>
    "tpu.trace_start"() <{level = 10 : i32, message = "bqk,bkd->bqd"}> : () -> ()
    %cst_35 = arith.constant dense<0.000000e+00> : vector<1x8x32xf32>
    %80 = tpu.matmul %78, %79, %cst_35 {dimension_numbers = #tpu.dot_dimension_numbers<[2], [1], [1], [2], [0, 0, 0, 1, 1, 2], [0], [0]>} : vector<1x8x8xbf16>, vector<1x8x32xbf16>, vector<1x8x32xf32> -> vector<1x8x32xf32>
    "tpu.trace_stop"() : () -> ()
    %81 = arith.truncf %80 : vector<1x8x32xf32> to vector<1x8x32xbf16>
    %c0_36 = arith.constant 0 : index
    %c0_37 = arith.constant 0 : index
    %c64 = arith.constant 64 : index
    %82 = vector.load %arg7[%c0_36, %c0_37, %c64] : memref<1x8x128xbf16, #tpu.memory_space<vmem>>, vector<1x8x32xbf16>
    tpu.vector_store %arg7[%c0_36, %c0_37, %c64], %81 {strides = array<i32>} : memref<1x8x128xbf16, #tpu.memory_space<vmem>>, vector<1x8x32xbf16>,
    %83 = vector.extract_strided_slice %8 {offsets = [0, 0, 96], sizes = [1, 8, 32], strides = [1, 1, 1]} : vector<1x8x128xbf16> to vector<1x8x32xbf16>
    %84 = vector.extract_strided_slice %9 {offsets = [0, 0, 96], sizes = [1, 8, 32], strides = [1, 1, 1]} : vector<1x8x128xbf16> to vector<1x8x32xbf16>
    "tpu.trace_start"() <{level = 10 : i32, message = "bqd,bkd->bqk"}> : () -> ()
    %cst_38 = arith.constant dense<0.000000e+00> : vector<1x8x8xf32>
    %85 = tpu.matmul %83, %84, %cst_38 {dimension_numbers = #tpu.dot_dimension_numbers<[2], [2], [1], [1], [0, 0, 0, 1, 1, 1], [0], [0]>} : vector<1x8x32xbf16>, vector<1x8x32xbf16>, vector<1x8x8xf32> -> vector<1x8x8xf32>
    "tpu.trace_stop"() : () -> ()
    %cst_39 = arith.constant 0.176776692 : f32
    %86 = vector.broadcast %cst_39 : f32 to vector<1x8x8xf32>
    %87 = arith.mulf %85, %86 : vector<1x8x8xf32>
    %88 = arith.addf %87, %7 : vector<1x8x8xf32>
    %cst_40 = arith.constant dense<0xFF800000> : vector<1x8xf32>
    %89 = vector.multi_reduction <maximumf>, %88, %cst_40 [2] : vector<1x8x8xf32> to vector<1x8xf32>
    %90 = vector.shape_cast %89 : vector<1x8xf32> to vector<1x8x1xf32>
    %91 = vector.broadcast %90 : vector<1x8x1xf32> to vector<1x8x8xf32>
    %92 = arith.subf %88, %91 : vector<1x8x8xf32>
    %93 = math.exp %92 : vector<1x8x8xf32>
    %cst_41 = arith.constant dense<0.000000e+00> : vector<1x8xf32>
    %94 = vector.multi_reduction <add>, %93, %cst_41 [2] : vector<1x8x8xf32> to vector<1x8xf32>
    %95 = vector.shape_cast %94 : vector<1x8xf32> to vector<1x8x1xf32>
    %96 = tpu.reciprocal %95 {approx = true} : vector<1x8x1xf32> -> vector<1x8x1xf32>
    %97 = vector.broadcast %96 : vector<1x8x1xf32> to vector<1x8x8xf32>
    %98 = arith.mulf %93, %97 : vector<1x8x8xf32>
    %c0_42 = arith.constant 0 : index
    %c3 = arith.constant 3 : index
    %c0_43 = arith.constant 0 : index
    %c0_44 = arith.constant 0 : index
    %99 = vector.load %arg6[%c0_42, %c3, %c0_43, %c0_44] : memref<1x4x8x8xf32, #tpu.memory_space<vmem>>, vector<1x1x8x8xf32>
    %100 = vector.shape_cast %99 : vector<1x1x8x8xf32> to vector<1x8x8xf32>
    %101 = vector.shape_cast %98 : vector<1x8x8xf32> to vector<1x1x8x8xf32>
    tpu.vector_store %arg6[%c0_42, %c3, %c0_43, %c0_44], %101 {strides = array<i32>} : memref<1x4x8x8xf32, #tpu.memory_space<vmem>>, vector<1x1x8x8xf32>,
    %102 = arith.truncf %98 : vector<1x8x8xf32> to vector<1x8x8xbf16>
    %103 = vector.extract_strided_slice %10 {offsets = [0, 0, 96], sizes = [1, 8, 32], strides = [1, 1, 1]} : vector<1x8x128xbf16> to vector<1x8x32xbf16>
    "tpu.trace_start"() <{level = 10 : i32, message = "bqk,bkd->bqd"}> : () -> ()
    %cst_45 = arith.constant dense<0.000000e+00> : vector<1x8x32xf32>
    %104 = tpu.matmul %102, %103, %cst_45 {dimension_numbers = #tpu.dot_dimension_numbers<[2], [1], [1], [2], [0, 0, 0, 1, 1, 2], [0], [0]>} : vector<1x8x8xbf16>, vector<1x8x32xbf16>, vector<1x8x32xf32> -> vector<1x8x32xf32>
    "tpu.trace_stop"() : () -> ()
    %105 = arith.truncf %104 : vector<1x8x32xf32> to vector<1x8x32xbf16>
    %c0_46 = arith.constant 0 : index
    %c0_47 = arith.constant 0 : index
    %c96 = arith.constant 96 : index
    %106 = vector.load %arg7[%c0_46, %c0_47, %c96] : memref<1x8x128xbf16, #tpu.memory_space<vmem>>, vector<1x8x32xbf16>
    tpu.vector_store %arg7[%c0_46, %c0_47, %c96], %105 {strides = array<i32>} : memref<1x8x128xbf16, #tpu.memory_space<vmem>>, vector<1x8x32xbf16>,
    %c0_48 = arith.constant 0 : index
    %c0_49 = arith.constant 0 : index
    %c0_50 = arith.constant 0 : index
    %107 = vector.load %arg7[%c0_48, %c0_49, %c0_50] : memref<1x8x128xbf16, #tpu.memory_space<vmem>>, vector<1x8x128xbf16>
    %108 = vector.shape_cast %107 : vector<1x8x128xbf16> to vector<8x128xbf16>
    %c0_51 = arith.constant 0 : index
    %c0_52 = arith.constant 0 : index
    %109 = vector.load %arg3[%c0_51, %c0_52] : memref<128x128xbf16, #tpu.memory_space<vmem>>, vector<128x128xbf16>
    %cst_53 = arith.constant dense<0.000000e+00> : vector<8x128xf32>
    %110 = tpu.matmul %108, %109, %cst_53 {dimension_numbers = #tpu.dot_dimension_numbers<[1], [0], [0], [1], [0, 0, 1, 1], [], []>} : vector<8x128xbf16>, vector<128x128xbf16>, vector<8x128xf32> -> vector<8x128xf32>
    %111 = vector.shape_cast %110 : vector<8x128xf32> to vector<1x8x128xf32>
    %c0_54 = arith.constant 0 : index
    %c0_55 = arith.constant 0 : index
    %c0_56 = arith.constant 0 : index
    %112 = vector.load %arg5[%c0_54, %c0_55, %c0_56] : memref<1x8x128xf32, #tpu.memory_space<vmem>>, vector<1x8x128xf32>
    tpu.vector_store %arg5[%c0_54, %c0_55, %c0_56], %111 {strides = array<i32>} : memref<1x8x128xf32, #tpu.memory_space<vmem>>, vector<1x8x128xf32>,
    return
  }
  func.func @transform_0(%arg0: i32) -> (i32, i32, i32) {
    %c0_i32 = arith.constant 0 : i32
    %c0_i32_0 = arith.constant 0 : i32
    %c0_i32_1 = arith.constant 0 : i32
    return %arg0, %c0_i32, %c0_i32_0 : i32, i32, i32
  }
  func.func @transform_1(%arg0: i32) -> (i32, i32) {
    %c0_i32 = arith.constant 0 : i32
    %c0_i32_0 = arith.constant 0 : i32
    %c0_i32_1 = arith.constant 0 : i32
    return %c0_i32, %c0_i32_0 : i32, i32
  }
  func.func @transform_2(%arg0: i32) -> (i32, i32) {
    %c0_i32 = arith.constant 0 : i32
    %c0_i32_0 = arith.constant 0 : i32
    %c0_i32_1 = arith.constant 0 : i32
    return %c0_i32, %c0_i32_0 : i32, i32
  }
  func.func @transform_3(%arg0: i32) -> (i32, i32) {
    %c0_i32 = arith.constant 0 : i32
    %c0_i32_0 = arith.constant 0 : i32
    %c0_i32_1 = arith.constant 0 : i32
    return %c0_i32, %c0_i32_0 : i32, i32
  }
  func.func @transform_4(%arg0: i32) -> (i32, i32, i32) {
    %c0_i32 = arith.constant 0 : i32
    %c0_i32_0 = arith.constant 0 : i32
    %c0_i32_1 = arith.constant 0 : i32
    return %arg0, %c0_i32, %c0_i32_0 : i32, i32, i32
  }
  func.func @transform_5(%arg0: i32) -> (i32, i32, i32, i32) {
    %c0_i32 = arith.constant 0 : i32
    %c0_i32_0 = arith.constant 0 : i32
    %c0_i32_1 = arith.constant 0 : i32
    %c0_i32_2 = arith.constant 0 : i32
    return %arg0, %c0_i32, %c0_i32_0, %c0_i32_1 : i32, i32, i32, i32
  }
}

</mosaic_0001>

<bundles_post_ra>
// kernel: tpu_custom_call.1
= control target key start
LH: loop header
LB: loop body
LE: loop exit
PB: predicated region body
PF: predicated region fallthrough
CT: control target
= control target key end

     0   :  { %s1820_s0 = inlined_call_operand.hbm [shape: bf16[4,8,128], index: 0, kind: input, shape index: {}]   ;;  %s1821_s1 = inlined_call_operand.hbm [shape: bf16[128,384], index: 1, kind: input, shape index: {}]   ;;  %s1822_s2 = inlined_call_operand.hbm [shape: bf16[128,128], index: 2, kind: input, shape index: {}]   ;;  %s1823_s3 = inlined_call_operand.hbm [shape: f32[8,8], index: 3, kind: input, shape index: {}]   ;;  %s1824_s4 = inlined_call_operand.hbm [shape: f32[4,8,128], index: 4, kind: output, shape index: {0}]   ;;  %s1825_s5 = inlined_call_operand.hbm [shape: f32[4,4,8,8], index: 5, kind: output, shape index: {1}]  }
   0x1   :  { %1826 = sst [smem:[#allocation19_spill]] %s1820_s0 }
   0x2   :  { %11 = vsyncpa [#allocation4], 0 }
   0x3   :  { %13 = vsyncpa [#allocation4 + $0x1], 0 }
   0x4   :  { %14 = vsyncpa [#allocation7], 0 }
   0x5   :  { %15 = vsyncpa [#allocation10], 0 }
   0x6   :  { %16 = vsyncpa [#allocation5], 0 }
   0x7   :  { %18 = vsyncpa [#allocation5 + $0x1], 0 }
   0x8   :  { %19 = vsyncpa [#allocation13], 0 }
   0x9   :  { %21 = vsyncpa [#allocation13 + $0x1], 0  ;;  %s1595_s18 = smov 0   ;;  %s1597_s19 = smov 0  }
   0xa   :  { %s1599_s20 = smov 0   ;;  %s1601_s21 = smov 0  }
   0xb LB: > { %s184_s24 = sshll.u32 %s1821_s1, 4  ;;  %s1619_s25 = sadd.s32 4294967295, %s1551_s21   ;;  %s1551_s21 = sphi %s1601_s21, %s1837_s21   ;;  %s1547_s20 = sphi %s1599_s20, %s1836_s20   ;;  %s1543_s19 = sphi %s1597_s19, %s1835_s19   ;;  %s1539_s18 = sphi %s1595_s18, %s1834_s18   ;;  %s185_s24 = int_to_ptr.hbm [resolvable:$true] %s184_s24 }
   0xc   : > { %p1025_p0 = scmp.ge.s32.totalorder %s1551_s21, 1  ;;  %p48_p1 = scmp.eq.s32.totalorder %s1619_s25, 0 }
   0xd   : > { %p173_p2 = scmp.lt.s32.totalorder %s1551_s21, 5  ;;  %s1553_s27 = smov [#allocation6]  }
   0xe   : > { %s186_s28 = sshll.u32 %s1553_s27, 4  ;;  %s198_s6 = sshll.u32 %s1822_s2, 4  ;;  %s187_s28 = int_to_ptr.vmem [resolvable:$true] %s186_s28  ;;  %s199_s6 = int_to_ptr.hbm [resolvable:$true] %s198_s6 }
   0xf   : > { %p1624_p3 = pnand %p1025_p0, %p173_p2  ;;  %s1554_s8 = smov [#allocation8]  }
  0x10   : > { %s200_s9 = sshll.u32 %s1554_s8, 4  ;;  %s1555_s10 = smov 192   ;;  %s201_s9 = int_to_ptr.vmem [resolvable:$true] %s200_s9 }
  0x11   : > { %p1236_p4 = pneg %p1624_p3  ;;  %s1556_s11 = smov 12  }
  0x12   : > { %s1557_s12 = smov 64   ;;  %s1558_s13 = smov 4  }
  0x13   : > { %p1635_p5 = pnand %p1236_p4, %p48_p1  ;;  %s213_s16 = sshll.u32 %s1823_s3, 4  ;;  %s214_s16 = int_to_ptr.hbm [resolvable:$true] %s213_s16 }
  0x14   : > { %s1559_s17 = smov [#allocation9]   ;;  %s1024_s23 = sadd.s32 4294967294, %s1551_s21  }
  0x15   : > { %1239 = dma.hbm_to_vmem [thread:$0]  (!%p1635_p5), %s185_s24, 3072, %s187_s28, [#allocation7], %s1555_s10, %s1555_s10, %s1556_s11  }
  0x16   : > { %1242 = dma.hbm_to_vmem [thread:$0]  (!%p1635_p5), %s199_s6, 1024, %s201_s9, [#allocation7], %s1557_s12, %s1557_s12, %s1558_s13  }
  0x17   : > { %s215_s22 = sshll.u32 %s1559_s17, 4  ;;  %s1650_s24 = sadd.s32 1, %s1551_s21   ;;  %s216_s22 = int_to_ptr.vmem [resolvable:$true] %s215_s22 }
  0x18   : > { %1245 = dma.hbm_to_vmem [thread:$0]  (!%p1635_p5), %s214_s16, 128, %s216_s22, [#allocation10]  }
  0x19   : > { %s34_s27 = sadd.s32 1, %s1547_s20  ;;  %s31_s28 = ssub.s32 %s1551_s21, %s1650_s24 }
  0x1a   : > { %p41_p6 = scmp.ne.s32.totalorder %s1547_s20, %s1543_s19  ;;  %p32_p7 = scmp.eq.s32.totalorder %s31_s28, 0 }
  0x1b   : > { %p42_p8 = scmp.eq.s32.totalorder %s1551_s21, 0  ;;  %p47_p9 = scmp.ne.s32.totalorder %s1543_s19, %s1539_s18 }
  0x1c   : > { %p134_p10 = scmp.eq.s32.totalorder %s1619_s25, 3  ;;  %p140_p13 = scmp.eq.s32.totalorder %s1024_s23, 3 }
  0x1d   : > { %s1662_s29 = scalar_select %p32_p7, %s1547_s20, %s34_s27  }
  0x1e   : > { %p1666_p11 = por %p48_p1, %p47_p9  ;;  %p1670_p12 = por %p134_p10, %p41_p6 }
  0x1f   : > { %p43_p0 = por %p42_p8, %p41_p6  ;;  %s226_s7 = sand.u32 1, %s1547_s20  }
  0x20   : > { %p1675_p2 = por %p140_p13, %p47_p9  ;;  %p1260_p4 = scmp.lt.s32.totalorder %s1551_s21, 4 }
  0x21   : > { %s1030_s9 = sshll.u32 %s226_s7, 2  ;;  %s1031_s10 = sshll.u32 %s1551_s21, 2 }
  0x22   : > { %s1832_s0 = sld [smem:[#allocation19_spill]]  ;;  %s230_s15 = scalar_lea.vmem [#allocation3], %s1030_s9 }
  0x23   : > { %s238_s16 = sshll.u32 %s230_s15, 4  ;;  %p1684_p5 = pnand %p1260_p4, %p43_p0  ;;  %s239_s16 = int_to_ptr.vmem [resolvable:$true] %s238_s16 }
  0x24   : > { %s227_s22 = scalar_lea.sflag [#allocation4], %s226_s7 }
  0x25   : > { %p1419_p7 = pneg %p1684_p5 }
  0x28   : > { %s234_s13 = scalar_lea.hbm %s1832_s0, %s1031_s10  ;;  %s1422_s9 = scalar_lea.hbm %s1832_s0, 16 }
  0x29   : > { %s236_s14 = sshll.u32 %s234_s13, 4  ;;  %s237_s14 = int_to_ptr.hbm [resolvable:$true] %s236_s14 }
  0x2a   : > { %s1415_s23 = sshra.s32 %s237_s14, 4  ;;  %s1416_s23 = int_to_ptr.hbm [resolvable:$true] %s1415_s23 }
  0x2b   : > { %s1417_s27 = scalar_lea.hbm %s1416_s23, 4  ;;  %p1423_p10 = scmp.lt.s32.totalorder %s1416_s23, %s1832_s0 }
  0x2c   : > { %p1418_p6 = scmp.ne.s32.totalorder %s1416_s23, %s1417_s27  ;;  %p1424_p13 = scmp.lt.s32.totalorder %s1422_s9, %s1417_s27 }
  0x2e   : > { %p1420_p8 = pnand %p1419_p7, %p1418_p6  ;;  %p1425_p0 = por %p1424_p13, %p1423_p10 }
  0x30   : > { %p1421_p9 = pneg %p1420_p8 }
  0x32   : > { %p1426_p4 = pnand %p1425_p0, %p1421_p9 }
  0x34   : > { %1429 = shalt.err (!%p1426_p4)
}
  0x35   : > { %1249 = dma.hbm_to_vmem [thread:$0]  (!%p1684_p5), %s237_s14, 64, %s239_s16, %s227_s22  }
  0x36   : > { %247 = sbr.rel (%p1624_p3) target bundleno = 1455 (0x5af), region = 36  ;;  %s1701_s7 = sand.u32 (!%p1624_p3), 1, %s1543_s19  }
  0x37   : > { %s1033_s13 = sshll.u32 (!%p1624_p3), %s1701_s7, 2  ;;  %s250_s15 = scalar_lea.sflag (!%p1624_p3), [#allocation4], %s1701_s7 }
  0x38   : > { %s1705_s28 = scalar_lea.vmem (!%p1624_p3), [#allocation3], %s1033_s13 }
  0x3b   : > { %1518 = dma.done.wait (%p1666_p11), %s250_s15, 64  }
  0x3c   : > { %1520 = vsyncadd (%p1666_p11), %s250_s15, 4294967232 }
  0x3d   : > { %1522 = dma.done.wait (%p48_p1), [#allocation7], 4096  }
  0x3e   : > { %1524 = vsyncadd (%p48_p1), [#allocation7], 4294963200 }
  0x3f   : > { %1526 = dma.done.wait (%p48_p1), [#allocation10], 128  }
  0x40   : > { %1528 = vsyncadd (%p48_p1), [#allocation10], 4294967168  ;;  %v1125_v0 = vld [vmem:[#allocation6 + $0xa8] sm:$0xf]  ;;  %v1207_v1 = vld [vmem:[#allocation6 + $0xb0] sm:$0xf0] }
  0x41   : > { %v1206_v2 = vld [vmem:[#allocation6 + $0xac] sm:$0xf]  ;;  %v1126_v3 = vor.u32 %v1207_v1, %v1125_v0  ;;  %v1127_v4 = vld [vmem:[#allocation6 + $0xb4] sm:$0xf0]  ;;  %v1113_v5 = vld [vmem:[#allocation6 + $0x90] sm:$0xf] }
  0x42   : > { %v1204_v6 = vld [vmem:[#allocation6 + $0x98] sm:$0xf0]  ;;  %v1130_v7 = vor.u32 %v1206_v2, %v1127_v4  ;;  %v1203_v8 = vld [vmem:[#allocation6 + $0x94] sm:$0xf]  ;;  %v1115_v9 = vld [vmem:[#allocation6 + $0x9c] sm:$0xf0] }
  0x43   : > { %463 = vmatpush.bf16.msra.mxu0 %v1126_v3  ;;  %v1114_v10 = vor.u32 %v1204_v6, %v1113_v5  ;;  %v1118_v11 = vor.u32 %v1203_v8, %v1115_v9  ;;  %v1101_v12 = vld [vmem:[#allocation6 + $0x78] sm:$0xf]  ;;  %v1201_v13 = vld [vmem:[#allocation6 + $0x80] sm:$0xf0]  ;;  %v1200_v14 = vld [vmem:[#allocation6 + $0x7c] sm:$0xf] }
  0x44   : > { %476 = vmatpush.bf16.msra.mxu1 %v1130_v7  ;;  %v1103_v15 = vld [vmem:[#allocation6 + $0x84] sm:$0xf0]  ;;  %v1102_v16 = vor.u32 %v1201_v13, %v1101_v12  ;;  %v1089_v18 = vld [vmem:[#allocation6 + $0x60] sm:$0xf]  ;;  %v1198_v19 = vld [vmem:[#allocation6 + $0x68] sm:$0xf0] }
  0x45   : > { %v1106_v17 = vor.u32 %v1200_v14, %v1103_v15  ;;  %v1197_v20 = vld [vmem:[#allocation6 + $0x64] sm:$0xf]  ;;  %v1091_v21 = vld [vmem:[#allocation6 + $0x6c] sm:$0xf0]  ;;  %v1090_v22 = vor.u32 %v1198_v19, %v1089_v18  ;;  %v1208_v24 = vld [vmem:[#allocation6 + $0xb8] sm:$0xf0] }
  0x46   : > { %v1133_v23 = vld [vmem:[#allocation6 + $0xb0] sm:$0xf]  ;;  %v1121_v25 = vld [vmem:[#allocation6 + $0x98] sm:$0xf]  ;;  %v1094_v26 = vor.u32 %v1197_v20, %v1091_v21  ;;  %v1077_v27 = vld [vmem:[#allocation6 + $0x48] sm:$0xf] }
  0x47   : > { %464 = vmatpush.bf16.msra.mxu0 %v1114_v10  ;;  %v1195_v28 = vld [vmem:[#allocation6 + $0x50] sm:$0xf0]  ;;  %v1134_v29 = vor.u32 %v1208_v24, %v1133_v23  ;;  %v1205_v30 = vld [vmem:[#allocation6 + $0xa0] sm:$0xf0]  ;;  %v1194_v31 = vld [vmem:[#allocation6 + $0x4c] sm:$0xf] }
  0x48   : > { %477 = vmatpush.bf16.msra.mxu1 %v1118_v11  ;;  %v1079_v32 = vld [vmem:[#allocation6 + $0x54] sm:$0xf0]  ;;  %v1122_v33 = vor.u32 %v1205_v30, %v1121_v25  ;;  %v1078_v34 = vor.u32 %v1195_v28, %v1077_v27  ;;  %v1109_v35 = vld [vmem:[#allocation6 + $0x80] sm:$0xf]  ;;  %v1202_v36 = vld [vmem:[#allocation6 + $0x88] sm:$0xf0] }
  0x49   : > { %489 = vmatpush.bf16.msra.mxu2 %v1134_v29  ;;  %v1082_v37 = vor.u32 %v1194_v31, %v1079_v32  ;;  %v1065_v38 = vld [vmem:[#allocation6 + $0x30] sm:$0xf]  ;;  %v1192_v39 = vld [vmem:[#allocation6 + $0x38] sm:$0xf0]  ;;  %v1191_v40 = vld [vmem:[#allocation6 + $0x34] sm:$0xf]  ;;  %v1110_v42 = vor.u32 %v1202_v36, %v1109_v35 }
  0x4a   : > { %v1067_v41 = vld [vmem:[#allocation6 + $0x3c] sm:$0xf0]  ;;  %v1066_v43 = vor.u32 %v1192_v39, %v1065_v38  ;;  %v1097_v44 = vld [vmem:[#allocation6 + $0x68] sm:$0xf]  ;;  %v1199_v45 = vld [vmem:[#allocation6 + $0x70] sm:$0xf0] }
  0x4b   : > { %465 = vmatpush.bf16.msra.mxu0 %v1102_v16  ;;  %v1070_v46 = vor.u32 %v1191_v40, %v1067_v41  ;;  %v1053_v47 = vld [vmem:[#allocation6 + $0x18] sm:$0xf]  ;;  %v1189_v48 = vld [vmem:[#allocation6 + $0x20] sm:$0xf0]  ;;  %v1188_v49 = vld [vmem:[#allocation6 + $0x1c] sm:$0xf]  ;;  %v1098_v51 = vor.u32 %v1199_v45, %v1097_v44 }
  0x4c   : > { %478 = vmatpush.bf16.msra.mxu1 %v1106_v17  ;;  %v1055_v50 = vld [vmem:[#allocation6 + $0x24] sm:$0xf0]  ;;  %v1054_v52 = vor.u32 %v1189_v48, %v1053_v47  ;;  %v1085_v53 = vld [vmem:[#allocation6 + $0x50] sm:$0xf]  ;;  %v1196_v54 = vld [vmem:[#allocation6 + $0x58] sm:$0xf0] }
  0x4d   : > { %490 = vmatpush.bf16.msra.mxu2 %v1122_v33  ;;  %v1058_v55 = vor.u32 %v1188_v49, %v1055_v50  ;;  %v1041_v56 = vld [vmem:[#allocation6] sm:$0xf]  ;;  %v1186_v57 = vld [vmem:[#allocation6 + $0x8] sm:$0xf0]  ;;  %v1185_v58 = vld [vmem:[#allocation6 + $0x4] sm:$0xf]  ;;  %v1086_v60 = vor.u32 %v1196_v54, %v1085_v53 }
  0x4e   : > { %v1043_v59 = vld [vmem:[#allocation6 + $0xc] sm:$0xf0]  ;;  %v1042_v61 = vor.u32 %v1186_v57, %v1041_v56  ;;  %v1073_v62 = vld [vmem:[#allocation6 + $0x38] sm:$0xf]  ;;  %v1193_v63 = vld [vmem:[#allocation6 + $0x40] sm:$0xf0] }
  0x4f   : > { %466 = vmatpush.bf16.msra.mxu0 %v1090_v22  ;;  %v1046_v0 = vor.u32 %v1185_v58, %v1043_v59  ;;  %v1074_v1 = vor.u32 %v1193_v63, %v1073_v62  ;;  %v302_v2 = vld [vmem:[%s1705_s28] sm:$0xf]  ;;  %v1061_v3 = vld [vmem:[#allocation6 + $0x20] sm:$0xf]  ;;  %v1190_v4 = vld [vmem:[#allocation6 + $0x28] sm:$0xf0] }
  0x50   : > { %479 = vmatpush.bf16.msra.mxu1 %v1094_v26  ;;  %v1062_v5 = vor.u32 %v1190_v4, %v1061_v3  ;;  %v1049_v6 = vld [vmem:[#allocation6 + $0x8] sm:$0xf]  ;;  %v1187_v7 = vld [vmem:[#allocation6 + $0x10] sm:$0xf0]  ;;  %vm507_vm0 = vcmask 261120   ;;  %s1560_s26 = smov 96  }
  0x51   : > { %491 = vmatpush.bf16.msra.mxu2 %v1110_v42  ;;  %v1050_v8 = vor.u32 %v1187_v7, %v1049_v6  ;;  %s1561_s30 = smov 64   ;;  %s1562_s14 = smov 32   ;;  %vm546_vm1 = vcmask 1043456   ;;  %v504_v29 = vld [vmem:[#allocation9] sm:$0xff]  ;;  %vm529_vm2 = vcmask 64512   ;;  %vm564_vm3 = vcmask 257024  }
  0x52   : > { %s1038_s16 = sshll.u32 %s1701_s7, 5  ;;  %vm637_vm4 = vcmask 519424   ;;  %vm705_vm5 = vcmask 781824   ;;  %vm773_vm6 = vcmask 1044224   ;;  %s1217_s22 = sshll.u32 %s1619_s25, 5 }
  0x53   : > { %467 = vmatpush.bf16.msra.mxu0 %v1078_v34  ;;  %s1737_s17 = scalar_lea.vmem [#allocation12], %s1038_s16  ;;  %s885_s10 = scalar_lea.hbm %s1825_s5, %s1217_s22 }
  0x54   : > { %480 = vmatpush.bf16.msra.mxu1 %v1082_v37  ;;  %s886_s9 = sshll.u32 %s1737_s17, 4  ;;  %s888_s11 = sshll.u32 %s885_s10, 4  ;;  %s887_s9 = int_to_ptr.vmem [resolvable:$true] %s886_s9  ;;  %s889_s11 = int_to_ptr.hbm [resolvable:$true] %s888_s11 }
  0x55   : > { %492 = vmatpush.bf16.msra.mxu2 %v1098_v51  ;;  %s860_s12 = scalar_lea.sflag [#allocation13], %s1701_s7  ;;  %s1459_s13 = sshra.s32 %s889_s11, 4  ;;  %s1460_s13 = int_to_ptr.hbm [resolvable:$true] %s1459_s13 }
  0x56   : > { %s1461_s15 = scalar_lea.hbm %s1460_s13, 32  ;;  %p1466_p5 = scmp.lt.s32.totalorder %s1460_s13, %s1825_s5 }
  0x57   : > { %468 = vmatpush.bf16.msra.mxu0 %v1066_v43  ;;  %p1462_p1 = scmp.ne.s32.totalorder %s1460_s13, %s1461_s15 }
  0x58   : > { %481 = vmatpush.bf16.msra.mxu1 %v1070_v46 }
  0x59   : > { %493 = vmatpush.bf16.msra.mxu2 %v1086_v60  ;;  %p1463_p3 = pnand %p1462_p1, %p1670_p12 }
  0x5b   : > { %469 = vmatpush.bf16.msra.mxu0 %v1054_v52  ;;  %p1464_p11 = pneg %p1463_p3 }
  0x5c   : > { %482 = vmatpush.bf16.msra.mxu1 %v1058_v55 }
  0x5d   : > { %494 = vmatpush.bf16.msra.mxu2 %v1074_v1 }
  0x5f   : > { %470 = vmatpush.bf16.msra.mxu0 %v1042_v61 }
  0x60   : > { %483 = vmatpush.bf16.msra.mxu1 %v1046_v0 }
  0x61   : > { %495 = vmatpush.bf16.msra.mxu2 %v1062_v5 }
  0x62   : > { %471 = vmatmul.bf16.vlgmr.msra.gmra.mxu0 %v302_v2 }
  0x63   : > { %484 = vmatmul.bf16.vlgmr.msra.gmra.mxu1 %v302_v2 }
  0x65   : > { %496 = vmatpush.bf16.msra.mxu2 %v1050_v8 }
  0x68   : > { %497 = vmatmul.bf16.vlgmr.msra.gmra.mxu2 %v302_v2 }
  0xdf   : > { %v472_v9 = vpop.f32.mrf.mxu0 }
  0xe0   : > { %v485_v10 = vpop.f32.mrf.mxu1 }
  0xe1   : > { %v502_v11 = vpack.c.bf16 %v485_v10, %v472_v9 }
  0xe3   : > { %566 = vrot.lane.b32.xlu1 %v502_v11, %s1560_s26  ;;  %v506_v12 = vrot.slane %v502_v11, 4  ;;  %v569_v13 = vunpack.c.l.b16 %v502_v11 }
  0xe5   : > { %v512_v14 = vsel %vm507_vm0, %v506_v12, 0  ;;  %v570_v15 = vpack.c.b16 %v569_v13, %v569_v13 }
  0xe6   : > { %521 = vmatpush.bf16.xpose.msra.mxu3 %v512_v14 }
  0xe7   : > { %571 = vrot.lane.b32.xlu2 %v570_v15, %s1560_s26  ;;  %v474_v16 = vpop.f32.mrf.mxu0 }
  0xe8   : > { %v487_v17 = vpop.f32.mrf.mxu1 }
  0xeb   : > { %639 = vrot.lane.b32.xlu1 %v502_v11, %s1561_s30  ;;  %v498_v18 = vpop.f32.mrf.mxu2 }
  0xec   : > { %v1727_v19 = vpack.c.bf16 %v498_v18, %v498_v18 }
  0xed   : > { %1135 = vmatmul.msk.bf16.vlgmr.msra.gmra.mxu3 %vm507_vm0, %v502_v11 }
  0xee   : > { %v548_v21 = vsel %vm546_vm1, %v1727_v19, 0  ;;  %v609_v3 = vunpack.c.l.b16 %v1727_v19 }
  0xef   : > { %707 = vrot.lane.b32.xlu2 %v502_v11, %s1562_s14  ;;  %557 = vmatpush.bf16.msrb.mxu3 %v548_v21 }
  0xf0   : > { %v610_v4 = vpack.c.b16 %v609_v3, %v609_v3 }
  0xf3   : > { %710 = vrot.lane.b32.xlu1 %v570_v15, %s1562_s14  ;;  %v500_v20 = vpop.f32.mrf.mxu2 }
 0x141   : > { %v572_v39 = vpop.permute.xlu2 %571 }
 0x149   : > { %v708_v41 = vpop.permute.xlu2 %707 }
 0x14a   : > { %v709_v43 = vrot.slane %v708_v41, 4 }
 0x14c   : > { %v716_v46 = vsel %vm507_vm0, %v709_v43, 0 }
 0x155   : > { %v567_v22 = vpop.permute.xlu1 %566 }
 0x156   : > { %v568_v23 = vrot.slane %v567_v22, 4 }
 0x158   : > { %v577_v24 = vsel %vm507_vm0, %v568_v23, 0 }
 0x159   : > { %586 = vmatpush.bf16.xpose.msra.mxu3 %v577_v24 }
 0x15d   : > { %v640_v25 = vpop.permute.xlu1 %639 }
 0x15e   : > { %v641_v26 = vrot.slane %v640_v25, 4 }
 0x160   : > { %v648_v27 = vsel %vm507_vm0, %v641_v26, 0 }
 0x161   : > { %657 = vmatpush.bf16.xpose.msrb.mxu2 %v648_v27 }
 0x165   : > { %v711_v48 = vpop.permute.xlu1 %710 }
 0x170   : > { %v523_v28 = vpop.f32.mrf.mxu3 }
 0x171   : > { %v527_v30 = vmul.f32 0.17677669, %v523_v28 }
 0x173   : > { %v528_v31 = vadd.f32 %v527_v30, %v504_v29 }
 0x175   : > { %v530_v32 = vsel %vm529_vm2, %v528_v31, -inf }
 0x176   : > { %531 = vmax.xlane.f32.xlu0 %v530_v32 }
 0x178   : > { %v525_v33 = vpop.f32.mrf.mxu3 }
 0x1e9   : > { %v532_v34 = vpop.xlane.xlu0 %531 }
 0x1ea   : > { %v533_v35 = vsub.f32 %v528_v31, %v532_v34 }
 0x1ec   : > { %v534_v36 = vmul.f32 1.442695, %v533_v35 }
 0x1ee   : > { %1309 = vpow2.f32 %v534_v36 }
 0x1f4   : > { %v1310_v37 = vpop.eup %1309 }
 0x1f5   : > { %v536_v38 = vsel %vm529_vm2, %v1310_v37, 0.0 }
 0x1f6   : > { %537 = vadd.xlane.f32.xlu0 %v536_v38 }
 0x20a   : > { %642 = vrot.lane.b32.xlu0 %v570_v15, %s1561_s30 }
 0x269   : > { %v538_v40 = vpop.xlane.xlu0 %537 }
 0x26a   : > { %1311 = vrcp.f32 %v538_v40 }
 0x270   : > { %v1312_v42 = vpop.eup %1311 }
 0x271   : > { %v540_v44 = vmul.f32 %v1312_v42, %v1310_v37 }
 0x273   : > { %541 = vst.msk [vmem:[%s1737_s17] sm:$0xff] %vm529_vm2, %v540_v44  ;;  %v542_v45 = vpack.c.bf16 %v540_v44, %v540_v44 }
 0x275   : > { %1136 = vmatmul.msk.bf16.vlgmr.msrb.gmra.mxu3 %vm529_vm2, %v542_v45 }
 0x276   : > { %725 = vmatpush.bf16.xpose.msrb.mxu3 %v716_v46 }
 0x27c   : > { %v643_v47 = vpop.permute.xlu0 %642 }
 0x27d   : > { %1140 = vmatmul.msk.bf16.vlgmr.msrb.gmra.mxu2 %vm507_vm0, %v643_v47  ;;  %v1216_v47 = vld [vmem:[#allocation8 + $0x38] sm:$0xff] }
 0x27e   : > { %840 = vmatpush.bf16.msrb.mxu1 %v1216_v47 }
 0x285   : > { %1137 = vmatmul.msk.bf16.vlgmr.msra.gmra.mxu3 %vm507_vm0, %v572_v39 }
 0x295   : > { %1143 = vmatmul.msk.bf16.vlgmr.msrb.gmra.mxu3 %vm507_vm0, %v711_v48  ;;  %v1215_v48 = vld [vmem:[#allocation8 + $0x30] sm:$0xff] }
 0x296   : > { %841 = vmatpush.bf16.msrb.mxu1 %v1215_v48 }
 0x2f8   : > { %v559_v49 = vpop.f32.mrf.mxu3 }
 0x2f9   : > { %v563_v50 = vpack.c.bf16 %v559_v49, %v559_v49  ;;  %v1214_v49 = vld [vmem:[#allocation8 + $0x28] sm:$0xff] }
 0x2fa   : > { %842 = vmatpush.bf16.msrb.mxu1 %v1214_v49 }
 0x2fb   : > { %565 = vst.msk [vmem:[#allocation2] sm:$0xf] %vm564_vm3, %v563_v50  ;;  %v1213_v50 = vld [vmem:[#allocation8 + $0x20] sm:$0xff] }
 0x2fe   : > { %843 = vmatpush.bf16.msrb.mxu1 %v1213_v50 }
 0x300   : > { %v561_v51 = vpop.f32.mrf.mxu3  ;;  %v659_v52 = vpop.f32.mrf.mxu2 }
 0x301   : > { %v663_v53 = vmul.f32 0.17677669, %v659_v52  ;;  %v1212_v51 = vld [vmem:[#allocation8 + $0x18] sm:$0xff]  ;;  %v1211_v52 = vld [vmem:[#allocation8 + $0x10] sm:$0xff] }
 0x302   : > { %844 = vmatpush.bf16.msrb.mxu1 %v1212_v51 }
 0x303   : > { %v664_v54 = vadd.f32 %v663_v53, %v504_v29 }
 0x305   : > { %v665_v55 = vsel %vm529_vm2, %v664_v54, -inf }
 0x306   : > { %666 = vmax.xlane.f32.xlu1 %v665_v55  ;;  %845 = vmatpush.bf16.msrb.mxu1 %v1211_v52  ;;  %v1210_v55 = vld [vmem:[#allocation8 + $0x8] sm:$0xff] }
 0x308   : > { %v588_v56 = vpop.f32.mrf.mxu3  ;;  %v661_v57 = vpop.f32.mrf.mxu2 }
 0x309   : > { %v592_v58 = vmul.f32 0.17677669, %v588_v56  ;;  %v1209_v56 = vld [vmem:[#allocation8] sm:$0xff] }
 0x30a   : > { %846 = vmatpush.bf16.msrb.mxu1 %v1210_v55 }
 0x30b   : > { %v593_v59 = vadd.f32 %v592_v58, %v504_v29 }
 0x30d   : > { %v594_v60 = vsel %vm529_vm2, %v593_v59, -inf }
 0x30e   : > { %595 = vmax.xlane.f32.xlu2 %v594_v60  ;;  %847 = vmatpush.bf16.msrb.mxu1 %v1209_v56 }
 0x310   : > { %v590_v61 = vpop.f32.mrf.mxu3 }
 0x318   : > { %v727_v62 = vpop.f32.mrf.mxu3 }
 0x319   : > { %v731_v63 = vmul.f32 0.17677669, %v727_v62 }
 0x31b   : > { %v732_v0 = vadd.f32 %v731_v63, %v504_v29 }
 0x31d   : > { %v733_v1 = vsel %vm529_vm2, %v732_v0, -inf }
 0x31e   : > { %734 = vmax.xlane.f32.xlu0 %v733_v1 }
 0x320   : > { %v729_v2 = vpop.f32.mrf.mxu3 }
 0x332   : > { %679 = vrot.lane.b32.xlu0 %v610_v4, %s1561_s30 }
 0x379   : > { %v667_v5 = vpop.xlane.xlu1 %666 }
 0x37a   : > { %v668_v6 = vsub.f32 %v664_v54, %v667_v5 }
 0x37c   : > { %v669_v7 = vmul.f32 1.442695, %v668_v6 }
 0x37e   : > { %1313 = vpow2.f32 %v669_v7 }
 0x381   : > { %v596_v8 = vpop.xlane.xlu2 %595 }
 0x382   : > { %v597_v9 = vsub.f32 %v593_v59, %v596_v8 }
 0x384   : > { %v1314_v10 = vpop.eup %1313  ;;  %v598_v11 = vmul.f32 1.442695, %v597_v9 }
 0x385   : > { %v671_v12 = vsel %vm529_vm2, %v1314_v10, 0.0 }
 0x386   : > { %1315 = vpow2.f32 %v598_v11  ;;  %672 = vadd.xlane.f32.xlu1 %v671_v12 }
 0x38c   : > { %v1316_v13 = vpop.eup %1315 }
 0x38d   : > { %v600_v14 = vsel %vm529_vm2, %v1316_v13, 0.0 }
 0x38e   : > { %601 = vadd.xlane.f32.xlu2 %v600_v14 }
 0x391   : > { %v735_v15 = vpop.xlane.xlu0 %734 }
 0x392   : > { %v736_v16 = vsub.f32 %v732_v0, %v735_v15 }
 0x394   : > { %v737_v17 = vmul.f32 1.442695, %v736_v16 }
 0x396   : > { %1317 = vpow2.f32 %v737_v17 }
 0x39c   : > { %v1318_v18 = vpop.eup %1317 }
 0x39d   : > { %v739_v19 = vsel %vm529_vm2, %v1318_v18, 0.0 }
 0x39e   : > { %740 = vadd.xlane.f32.xlu1 %v739_v19 }
 0x3a4   : > { %v680_v20 = vpop.permute.xlu0 %679 }
 0x3a5   : > { %v685_v21 = vsel %vm546_vm1, %v680_v20, 0 }
 0x3a6   : > { %611 = vrot.lane.b32.xlu2 %v610_v4, %s1560_s26  ;;  %694 = vmatpush.bf16.msra.mxu2 %v685_v21 }
 0x3b7   : > { %747 = vrot.lane.b32.xlu1 %v610_v4, %s1562_s14 }
 0x3f9   : > { %v673_v22 = vpop.xlane.xlu1 %672 }
 0x3fa   : > { %1319 = vrcp.f32 %v673_v22 }
 0x400   : > { %v1320_v23 = vpop.eup %1319 }
 0x401   : > { %v675_v24 = vmul.f32 %v1320_v23, %v1314_v10  ;;  %v602_v25 = vpop.xlane.xlu2 %601 }
 0x402   : > { %1321 = vrcp.f32 %v602_v25 }
 0x403   : > { %1141 = vst.msk [vmem:[%s1737_s17 + $0x10] sm:$0xff] %vm529_vm2, %v675_v24  ;;  %v678_v26 = vpack.c.bf16 %v675_v24, %v675_v24 }
 0x405   : > { %1142 = vmatmul.msk.bf16.vlgmr.msra.gmra.mxu2 %vm529_vm2, %v678_v26 }
 0x408   : > { %v1322_v27 = vpop.eup %1321 }
 0x409   : > { %v604_v28 = vmul.f32 %v1322_v27, %v1316_v13  ;;  %v612_v29 = vpop.permute.xlu2 %611 }
 0x40a   : > { %v617_v30 = vsel %vm546_vm1, %v612_v29, 0 }
 0x40b   : > { %1138 = vst.msk [vmem:[%s1737_s17 + $0x8] sm:$0xff] %vm529_vm2, %v604_v28  ;;  %626 = vmatpush.bf16.msrb.mxu0 %v617_v30  ;;  %v607_v31 = vpack.c.bf16 %v604_v28, %v604_v28 }
 0x40e   : > { %1139 = vmatmul.msk.bf16.vlgmr.msrb.gmra.mxu0 %vm529_vm2, %v607_v31 }
 0x411   : > { %v741_v32 = vpop.xlane.xlu1 %740 }
 0x412   : > { %1323 = vrcp.f32 %v741_v32 }
 0x418   : > { %v1324_v33 = vpop.eup %1323 }
 0x419   : > { %v743_v34 = vmul.f32 %v1324_v33, %v1318_v18 }
 0x41b   : > { %1144 = vst.msk [vmem:[%s1737_s17 + $0x18] sm:$0xff] %vm529_vm2, %v743_v34  ;;  %v746_v37 = vpack.c.bf16 %v743_v34, %v743_v34 }
 0x429   : > { %v748_v35 = vpop.permute.xlu1 %747 }
 0x42a   : > { %v753_v36 = vsel %vm546_vm1, %v748_v35, 0 }
 0x42b   : > { %762 = vmatpush.bf16.msra.mxu0 %v753_v36 }
 0x42e   : > { %1145 = vmatmul.msk.bf16.vlgmr.msra.gmra.mxu0 %vm529_vm2, %v746_v37 }
 0x488   : > { %v696_v38 = vpop.f32.mrf.mxu2 }
 0x489   : > { %v700_v43 = vpack.c.bf16 %v696_v38, %v696_v38 }
 0x48b   : > { %v628_v39 = vpop.f32.mrf.mxu0 }
 0x48c   : > { %v632_v40 = vpack.c.bf16 %v628_v39, %v628_v39 }
 0x48e   : > { %634 = vrot.lane.b32.xlu2 %v632_v40, %s1562_s14 }
 0x490   : > { %v698_v41 = vpop.f32.mrf.mxu2 }
 0x493   : > { %v630_v42 = vpop.f32.mrf.mxu0 }
 0x496   : > { %702 = vrot.lane.b32.xlu2 %v700_v43, %s1561_s30  ;;  %s1465_s30 = scalar_lea.hbm %s1825_s5, 128 }
 0x497   : > { %p1467_p6 = scmp.lt.s32.totalorder %s1465_s30, %s1461_s15 }
 0x499   : > { %p1468_p7 = por %p1467_p6, %p1466_p5 }
 0x49b   : > { %p1469_p8 = pnand %p1468_p7, %p1464_p11 }
 0x4ab   : > { %v764_v44 = vpop.f32.mrf.mxu0 }
 0x4ac   : > { %v768_v45 = vpack.c.bf16 %v764_v44, %v764_v44 }
 0x4ae   : > { %770 = vrot.lane.b32.xlu0 %v768_v45, %s1560_s26 }
 0x4b3   : > { %v766_v46 = vpop.f32.mrf.mxu0 }
 0x4e8   : > { %v635_v53 = vpop.permute.xlu2 %634 }
 0x4e9   : > { %638 = vst.msk [vmem:[#allocation2] sm:$0xf] %vm637_vm4, %v635_v53 }
 0x4f0   : > { %v703_v54 = vpop.permute.xlu2 %702 }
 0x4f1   : > { %706 = vst.msk [vmem:[#allocation2] sm:$0xf] %vm705_vm5, %v703_v54 }
 0x520   : > { %v771_v57 = vpop.permute.xlu0 %770 }
 0x521   : > { %774 = vst.msk [vmem:[#allocation2] sm:$0xf] %vm773_vm6, %v771_v57 }
 0x528   : > { %v775_v58 = vld [vmem:[#allocation2] sm:$0xf] }
 0x529   : > { %848 = vmatmul.bf16.vlgmr.msrb.gmra.mxu1 %v775_v58 }
 0x52a   : > { %1472 = shalt.err (!%p1469_p8)
}
 0x52b   : > { %s1563_s17 = smov 128   ;;  %s1564_s22 = smov 8  }
 0x52c   : > { %1233 = dma.vmem_to_hbm [thread:$0]  (%p1670_p12), %s887_s9, 512, %s889_s11, %s860_s12, %s1563_s17, %s1563_s17, %s1564_s22  }
 0x52d   : > { %s1180_s23 = sshll.u32 %s1619_s25, 3  ;;  %s1037_s27 = sshll.u32 %s1701_s7, 3 }
 0x52e   : > { %s870_s26 = scalar_lea.hbm %s1824_s4, %s1180_s23  ;;  %s293_s13 = scalar_lea.vmem [#allocation11], %s1037_s27 }
 0x52f   : > { %s872_s15 = sshll.u32 %s293_s13, 4  ;;  %s874_s30 = sshll.u32 %s870_s26, 4  ;;  %s873_s15 = int_to_ptr.vmem [resolvable:$true] %s872_s15  ;;  %s875_s30 = int_to_ptr.hbm [resolvable:$true] %s874_s30 }
 0x530   : > { %s855_s14 = scalar_lea.sflag [#allocation5], %s1701_s7  ;;  %s1487_s16 = sshra.s32 %s875_s30, 4  ;;  %s1488_s16 = int_to_ptr.hbm [resolvable:$true] %s1487_s16 }
 0x531   : > { %s1489_s0 = scalar_lea.hbm %s1488_s16, 8  ;;  %s1493_s11 = scalar_lea.hbm %s1824_s4, 32 }
 0x532   : > { %p1490_p9 = scmp.ne.s32.totalorder %s1488_s16, %s1489_s0  ;;  %p1494_p0 = scmp.lt.s32.totalorder %s1488_s16, %s1824_s4 }
 0x533   : > { %p1495_p4 = scmp.lt.s32.totalorder %s1493_s11, %s1489_s0 }
 0x534   : > { %p1491_p10 = pnand %p1490_p9, %p1670_p12 }
 0x535   : > { %p1496_p1 = por %p1495_p4, %p1494_p0 }
 0x536   : > { %p1492_p13 = pneg %p1491_p10 }
 0x538   : > { %p1497_p3 = pnand %p1496_p1, %p1492_p13 }
 0x5a6   : > { %v849_v59 = vpop.f32.mrf.mxu1 }
 0x5a7   : > { %853 = vst [vmem:[%s293_s13] sm:$0xff] %v849_v59 }
 0x5a8   : > { %1500 = shalt.err (!%p1497_p3)
}
 0x5a9   : > { %1232 = dma.vmem_to_hbm [thread:$0]  (%p1670_p12), %s873_s15, 128, %s875_s30, %s855_s14  }
 0x5ae   : > { %v851_v60 = vpop.f32.mrf.mxu1 }
 0x5af PF: > { %p1264_p11 = scmp.ge.s32.totalorder %s1551_s21, 2  ;;  %s903_s7 = sand.u32 1, %s1539_s18  }
 0x5b0   : > { %s904_s22 = scalar_lea.sflag [#allocation5], %s903_s7 }
 0x5b1   : > { %p1251_p5 = pnand %p1264_p11, %p1675_p2 }
 0x5b3   : > { %p1252_p6 = pneg %p1251_p5 }
 0x5b5   : > { %1530 = dma.done.wait (%p1252_p6), %s904_s22, 128  }
 0x5b6   : > { %1532 = vsyncadd (%p1252_p6), %s904_s22, 4294967168  ;;  %s914_s0 = scalar_lea.sflag [#allocation13], %s903_s7 }
 0x5b7   : > { %1534 = dma.done.wait (%p1252_p6), %s914_s0, 512  }
 0x5b8   : > { %1536 = vsyncadd (%p1252_p6), %s914_s0, 4294966784  ;;  %p24_p12 = scmp.ge.s32.totalorder %s1650_s24, 6   ;;  %s1834_s18 = smov %s1543_s19 }
 0x5b9   : > { %s1835_s19 = smov %s1547_s20  ;;  %s1836_s20 = smov %s1662_s29 }
 0x5ba   : > { %s1837_s21 = smov %s1650_s24  ;;  %26 = sbr.rel (!%p24_p12) target bundleno = 11 (0xb), region = 113 }
 0x5bf   :  { %920 = vsyncpa [#allocation4], 1 }
 0x5c0   :  { %922 = vsyncpa [#allocation4 + $0x1], 1 }
 0x5c1   :  { %923 = vsyncpa [#allocation7], 1 }
 0x5c2   :  { %924 = vsyncpa [#allocation10], 1 }
 0x5c3   :  { %925 = vsyncpa [#allocation5], 1 }
 0x5c4   :  { %927 = vsyncpa [#allocation5 + $0x1], 1 }
 0x5c5   :  { %928 = vsyncpa [#allocation13], 1 }
 0x5c6   :  { %930 = vsyncpa [#allocation13 + $0x1], 1 }

// kernel: tpu_custom_call.1
= control target key start
LH: loop header
LB: loop body
LE: loop exit
PB: predicated region body
PF: predicated region fallthrough
CT: control target
= control target key end

     0   :  { %s1820_s0 = inlined_call_operand.hbm [shape: bf16[4,8,128], index: 0, kind: input, shape index: {}]   ;;  %s1821_s1 = inlined_call_operand.hbm [shape: bf16[128,384], index: 1, kind: input, shape index: {}]   ;;  %s1822_s2 = inlined_call_operand.hbm [shape: bf16[128,128], index: 2, kind: input, shape index: {}]   ;;  %s1823_s3 = inlined_call_operand.hbm [shape: f32[8,8], index: 3, kind: input, shape index: {}]   ;;  %s1824_s4 = inlined_call_operand.hbm [shape: f32[4,8,128], index: 4, kind: output, shape index: {0}]   ;;  %s1825_s5 = inlined_call_operand.hbm [shape: f32[4,4,8,8], index: 5, kind: output, shape index: {1}]  }
   0x1   :  { %1826 = sst [smem:[#allocation19_spill]] %s1820_s0 }
   0x2   :  { %11 = vsyncpa [#allocation4], 0 }
   0x3   :  { %13 = vsyncpa [#allocation4 + $0x1], 0 }
   0x4   :  { %14 = vsyncpa [#allocation7], 0 }
   0x5   :  { %15 = vsyncpa [#allocation10], 0 }
   0x6   :  { %16 = vsyncpa [#allocation5], 0 }
   0x7   :  { %18 = vsyncpa [#allocation5 + $0x1], 0 }
   0x8   :  { %19 = vsyncpa [#allocation13], 0 }
   0x9   :  { %21 = vsyncpa [#allocation13 + $0x1], 0  ;;  %s1595_s18 = smov 0   ;;  %s1597_s19 = smov 0  }
   0xa   :  { %s1599_s20 = smov 0   ;;  %s1601_s21 = smov 0  }
   0xb LB: > { %s184_s24 = sshll.u32 %s1821_s1, 4  ;;  %s1619_s25 = sadd.s32 4294967295, %s1551_s21   ;;  %s1551_s21 = sphi %s1601_s21, %s1837_s21   ;;  %s1547_s20 = sphi %s1599_s20, %s1836_s20   ;;  %s1543_s19 = sphi %s1597_s19, %s1835_s19   ;;  %s1539_s18 = sphi %s1595_s18, %s1834_s18   ;;  %s185_s24 = int_to_ptr.hbm [resolvable:$true] %s184_s24 }
   0xc   : > { %p1025_p0 = scmp.ge.s32.totalorder %s1551_s21, 1  ;;  %p48_p1 = scmp.eq.s32.totalorder %s1619_s25, 0 }
   0xd   : > { %p173_p2 = scmp.lt.s32.totalorder %s1551_s21, 5  ;;  %s1553_s27 = smov [#allocation6]  }
   0xe   : > { %s186_s28 = sshll.u32 %s1553_s27, 4  ;;  %s198_s6 = sshll.u32 %s1822_s2, 4  ;;  %s187_s28 = int_to_ptr.vmem [resolvable:$true] %s186_s28  ;;  %s199_s6 = int_to_ptr.hbm [resolvable:$true] %s198_s6 }
   0xf   : > { %p1624_p3 = pnand %p1025_p0, %p173_p2  ;;  %s1554_s8 = smov [#allocation8]  }
  0x10   : > { %s200_s9 = sshll.u32 %s1554_s8, 4  ;;  %s1555_s10 = smov 192   ;;  %s201_s9 = int_to_ptr.vmem [resolvable:$true] %s200_s9 }
  0x11   : > { %p1236_p4 = pneg %p1624_p3  ;;  %s1556_s11 = smov 12  }
  0x12   : > { %s1557_s12 = smov 64   ;;  %s1558_s13 = smov 4  }
  0x13   : > { %p1635_p5 = pnand %p1236_p4, %p48_p1  ;;  %s213_s16 = sshll.u32 %s1823_s3, 4  ;;  %s214_s16 = int_to_ptr.hbm [resolvable:$true] %s213_s16 }
  0x14   : > { %s1559_s17 = smov [#allocation9]   ;;  %s1024_s23 = sadd.s32 4294967294, %s1551_s21  }
  0x15   : > { %1239 = dma.hbm_to_vmem [thread:$0]  (!%p1635_p5), %s185_s24, 3072, %s187_s28, [#allocation7], %s1555_s10, %s1555_s10, %s1556_s11  }
  0x16   : > { %1242 = dma.hbm_to_vmem [thread:$0]  (!%p1635_p5), %s199_s6, 1024, %s201_s9, [#allocation7], %s1557_s12, %s1557_s12, %s1558_s13  }
  0x17   : > { %s215_s22 = sshll.u32 %s1559_s17, 4  ;;  %s1650_s24 = sadd.s32 1, %s1551_s21   ;;  %s216_s22 = int_to_ptr.vmem [resolvable:$true] %s215_s22 }
  0x18   : > { %1245 = dma.hbm_to_vmem [thread:$0]  (!%p1635_p5), %s214_s16, 128, %s216_s22, [#allocation10]  }
  0x19   : > { %s34_s27 = sadd.s32 1, %s1547_s20  ;;  %s31_s28 = ssub.s32 %s1551_s21, %s1650_s24 }
  0x1a   : > { %p41_p6 = scmp.ne.s32.totalorder %s1547_s20, %s1543_s19  ;;  %p32_p7 = scmp.eq.s32.totalorder %s31_s28, 0 }
  0x1b   : > { %p42_p8 = scmp.eq.s32.totalorder %s1551_s21, 0  ;;  %p47_p9 = scmp.ne.s32.totalorder %s1543_s19, %s1539_s18 }
  0x1c   : > { %p134_p10 = scmp.eq.s32.totalorder %s1619_s25, 3  ;;  %p140_p13 = scmp.eq.s32.totalorder %s1024_s23, 3 }
  0x1d   : > { %s1662_s29 = scalar_select %p32_p7, %s1547_s20, %s34_s27  }
  0x1e   : > { %p1666_p11 = por %p48_p1, %p47_p9  ;;  %p1670_p12 = por %p134_p10, %p41_p6 }
  0x1f   : > { %p43_p0 = por %p42_p8, %p41_p6  ;;  %s226_s7 = sand.u32 1, %s1547_s20  }
  0x20   : > { %p1675_p2 = por %p140_p13, %p47_p9  ;;  %p1260_p4 = scmp.lt.s32.totalorder %s1551_s21, 4 }
  0x21   : > { %s1030_s9 = sshll.u32 %s226_s7, 2  ;;  %s1031_s10 = sshll.u32 %s1551_s21, 2 }
  0x22   : > { %s1832_s0 = sld [smem:[#allocation19_spill]]  ;;  %s230_s15 = scalar_lea.vmem [#allocation3], %s1030_s9 }
  0x23   : > { %s238_s16 = sshll.u32 %s230_s15, 4  ;;  %p1684_p5 = pnand %p1260_p4, %p43_p0  ;;  %s239_s16 = int_to_ptr.vmem [resolvable:$true] %s238_s16 }
  0x24   : > { %s227_s22 = scalar_lea.sflag [#allocation4], %s226_s7 }
  0x25   : > { %p1419_p7 = pneg %p1684_p5 }
  0x28   : > { %s234_s13 = scalar_lea.hbm %s1832_s0, %s1031_s10  ;;  %s1422_s9 = scalar_lea.hbm %s1832_s0, 16 }
  0x29   : > { %s236_s14 = sshll.u32 %s234_s13, 4  ;;  %s237_s14 = int_to_ptr.hbm [resolvable:$true] %s236_s14 }
  0x2a   : > { %s1415_s23 = sshra.s32 %s237_s14, 4  ;;  %s1416_s23 = int_to_ptr.hbm [resolvable:$true] %s1415_s23 }
  0x2b   : > { %s1417_s27 = scalar_lea.hbm %s1416_s23, 4  ;;  %p1423_p10 = scmp.lt.s32.totalorder %s1416_s23, %s1832_s0 }
  0x2c   : > { %p1418_p6 = scmp.ne.s32.totalorder %s1416_s23, %s1417_s27  ;;  %p1424_p13 = scmp.lt.s32.totalorder %s1422_s9, %s1417_s27 }
  0x2e   : > { %p1420_p8 = pnand %p1419_p7, %p1418_p6  ;;  %p1425_p0 = por %p1424_p13, %p1423_p10 }
  0x30   : > { %p1421_p9 = pneg %p1420_p8 }
  0x32   : > { %p1426_p4 = pnand %p1425_p0, %p1421_p9 }
  0x34   : > { %1429 = shalt.err (!%p1426_p4)
}
  0x35   : > { %1249 = dma.hbm_to_vmem [thread:$0]  (!%p1684_p5), %s237_s14, 64, %s239_s16, %s227_s22  }
  0x36   : > { %247 = sbr.rel (%p1624_p3) target bundleno = 1455 (0x5af), region = 36  ;;  %s1701_s7 = sand.u32 (!%p1624_p3), 1, %s1543_s19  }
  0x37   : > { %s1033_s13 = sshll.u32 (!%p1624_p3), %s1701_s7, 2  ;;  %s250_s15 = scalar_lea.sflag (!%p1624_p3), [#allocation4], %s1701_s7 }
  0x38   : > { %s1705_s28 = scalar_lea.vmem (!%p1624_p3), [#allocation3], %s1033_s13 }
  0x3b   : > { %1518 = dma.done.wait (%p1666_p11), %s250_s15, 64  }
  0x3c   : > { %1520 = vsyncadd (%p1666_p11), %s250_s15, 4294967232 }
  0x3d   : > { %1522 = dma.done.wait (%p48_p1), [#allocation7], 4096  }
  0x3e   : > { %1524 = vsyncadd (%p48_p1), [#allocation7], 4294963200 }
  0x3f   : > { %1526 = dma.done.wait (%p48_p1), [#allocation10], 128  }
  0x40   : > { %1528 = vsyncadd (%p48_p1), [#allocation10], 4294967168  ;;  %v1125_v0 = vld [vmem:[#allocation6 + $0xa8] sm:$0xf]  ;;  %v1207_v1 = vld [vmem:[#allocation6 + $0xb0] sm:$0xf0] }
  0x41   : > { %v1206_v2 = vld [vmem:[#allocation6 + $0xac] sm:$0xf]  ;;  %v1126_v3 = vor.u32 %v1207_v1, %v1125_v0  ;;  %v1127_v4 = vld [vmem:[#allocation6 + $0xb4] sm:$0xf0]  ;;  %v1113_v5 = vld [vmem:[#allocation6 + $0x90] sm:$0xf] }
  0x42   : > { %v1204_v6 = vld [vmem:[#allocation6 + $0x98] sm:$0xf0]  ;;  %v1130_v7 = vor.u32 %v1206_v2, %v1127_v4  ;;  %v1203_v8 = vld [vmem:[#allocation6 + $0x94] sm:$0xf]  ;;  %v1115_v9 = vld [vmem:[#allocation6 + $0x9c] sm:$0xf0] }
  0x43   : > { %463 = vmatpush.bf16.msra.mxu0 %v1126_v3  ;;  %v1114_v10 = vor.u32 %v1204_v6, %v1113_v5  ;;  %v1118_v11 = vor.u32 %v1203_v8, %v1115_v9  ;;  %v1101_v12 = vld [vmem:[#allocation6 + $0x78] sm:$0xf]  ;;  %v1201_v13 = vld [vmem:[#allocation6 + $0x80] sm:$0xf0]  ;;  %v1200_v14 = vld [vmem:[#allocation6 + $0x7c] sm:$0xf] }
  0x44   : > { %476 = vmatpush.bf16.msra.mxu1 %v1130_v7  ;;  %v1103_v15 = vld [vmem:[#allocation6 + $0x84] sm:$0xf0]  ;;  %v1102_v16 = vor.u32 %v1201_v13, %v1101_v12  ;;  %v1089_v18 = vld [vmem:[#allocation6 + $0x60] sm:$0xf]  ;;  %v1198_v19 = vld [vmem:[#allocation6 + $0x68] sm:$0xf0] }
  0x45   : > { %v1106_v17 = vor.u32 %v1200_v14, %v1103_v15  ;;  %v1197_v20 = vld [vmem:[#allocation6 + $0x64] sm:$0xf]  ;;  %v1091_v21 = vld [vmem:[#allocation6 + $0x6c] sm:$0xf0]  ;;  %v1090_v22 = vor.u32 %v1198_v19, %v1089_v18  ;;  %v1208_v24 = vld [vmem:[#allocation6 + $0xb8] sm:$0xf0] }
  0x46   : > { %v1133_v23 = vld [vmem:[#allocation6 + $0xb0] sm:$0xf]  ;;  %v1121_v25 = vld [vmem:[#allocation6 + $0x98] sm:$0xf]  ;;  %v1094_v26 = vor.u32 %v1197_v20, %v1091_v21  ;;  %v1077_v27 = vld [vmem:[#allocation6 + $0x48] sm:$0xf] }
  0x47   : > { %464 = vmatpush.bf16.msra.mxu0 %v1114_v10  ;;  %v1195_v28 = vld [vmem:[#allocation6 + $0x50] sm:$0xf0]  ;;  %v1134_v29 = vor.u32 %v1208_v24, %v1133_v23  ;;  %v1205_v30 = vld [vmem:[#allocation6 + $0xa0] sm:$0xf0]  ;;  %v1194_v31 = vld [vmem:[#allocation6 + $0x4c] sm:$0xf] }
  0x48   : > { %477 = vmatpush.bf16.msra.mxu1 %v1118_v11  ;;  %v1079_v32 = vld [vmem:[#allocation6 + $0x54] sm:$0xf0]  ;;  %v1122_v33 = vor.u32 %v1205_v30, %v1121_v25  ;;  %v1078_v34 = vor.u32 %v1195_v28, %v1077_v27  ;;  %v1109_v35 = vld [vmem:[#allocation6 + $0x80] sm:$0xf]  ;;  %v1202_v36 = vld [vmem:[#allocation6 + $0x88] sm:$0xf0] }
  0x49   : > { %489 = vmatpush.bf16.msra.mxu2 %v1134_v29  ;;  %v1082_v37 = vor.u32 %v1194_v31, %v1079_v32  ;;  %v1065_v38 = vld [vmem:[#allocation6 + $0x30] sm:$0xf]  ;;  %v1192_v39 = vld [vmem:[#allocation6 + $0x38] sm:$0xf0]  ;;  %v1191_v40 = vld [vmem:[#allocation6 + $0x34] sm:$0xf]  ;;  %v1110_v42 = vor.u32 %v1202_v36, %v1109_v35 }
  0x4a   : > { %v1067_v41 = vld [vmem:[#allocation6 + $0x3c] sm:$0xf0]  ;;  %v1066_v43 = vor.u32 %v1192_v39, %v1065_v38  ;;  %v1097_v44 = vld [vmem:[#allocation6 + $0x68] sm:$0xf]  ;;  %v1199_v45 = vld [vmem:[#allocation6 + $0x70] sm:$0xf0] }
  0x4b   : > { %465 = vmatpush.bf16.msra.mxu0 %v1102_v16  ;;  %v1070_v46 = vor.u32 %v1191_v40, %v1067_v41  ;;  %v1053_v47 = vld [vmem:[#allocation6 + $0x18] sm:$0xf]  ;;  %v1189_v48 = vld [vmem:[#allocation6 + $0x20] sm:$0xf0]  ;;  %v1188_v49 = vld [vmem:[#allocation6 + $0x1c] sm:$0xf]  ;;  %v1098_v51 = vor.u32 %v1199_v45, %v1097_v44 }
  0x4c   : > { %478 = vmatpush.bf16.msra.mxu1 %v1106_v17  ;;  %v1055_v50 = vld [vmem:[#allocation6 + $0x24] sm:$0xf0]  ;;  %v1054_v52 = vor.u32 %v1189_v48, %v1053_v47  ;;  %v1085_v53 = vld [vmem:[#allocation6 + $0x50] sm:$0xf]  ;;  %v1196_v54 = vld [vmem:[#allocation6 + $0x58] sm:$0xf0] }
  0x4d   : > { %490 = vmatpush.bf16.msra.mxu2 %v1122_v33  ;;  %v1058_v55 = vor.u32 %v1188_v49, %v1055_v50  ;;  %v1041_v56 = vld [vmem:[#allocation6] sm:$0xf]  ;;  %v1186_v57 = vld [vmem:[#allocation6 + $0x8] sm:$0xf0]  ;;  %v1185_v58 = vld [vmem:[#allocation6 + $0x4] sm:$0xf]  ;;  %v1086_v60 = vor.u32 %v1196_v54, %v1085_v53 }
  0x4e   : > { %v1043_v59 = vld [vmem:[#allocation6 + $0xc] sm:$0xf0]  ;;  %v1042_v61 = vor.u32 %v1186_v57, %v1041_v56  ;;  %v1073_v62 = vld [vmem:[#allocation6 + $0x38] sm:$0xf]  ;;  %v1193_v63 = vld [vmem:[#allocation6 + $0x40] sm:$0xf0] }
  0x4f   : > { %466 = vmatpush.bf16.msra.mxu0 %v1090_v22  ;;  %v1046_v0 = vor.u32 %v1185_v58, %v1043_v59  ;;  %v1074_v1 = vor.u32 %v1193_v63, %v1073_v62  ;;  %v302_v2 = vld [vmem:[%s1705_s28] sm:$0xf]  ;;  %v1061_v3 = vld [vmem:[#allocation6 + $0x20] sm:$0xf]  ;;  %v1190_v4 = vld [vmem:[#allocation6 + $0x28] sm:$0xf0] }
  0x50   : > { %479 = vmatpush.bf16.msra.mxu1 %v1094_v26  ;;  %v1062_v5 = vor.u32 %v1190_v4, %v1061_v3  ;;  %v1049_v6 = vld [vmem:[#allocation6 + $0x8] sm:$0xf]  ;;  %v1187_v7 = vld [vmem:[#allocation6 + $0x10] sm:$0xf0]  ;;  %vm507_vm0 = vcmask 261120   ;;  %s1560_s26 = smov 96  }
  0x51   : > { %491 = vmatpush.bf16.msra.mxu2 %v1110_v42  ;;  %v1050_v8 = vor.u32 %v1187_v7, %v1049_v6  ;;  %s1561_s30 = smov 64   ;;  %s1562_s14 = smov 32   ;;  %vm546_vm1 = vcmask 1043456   ;;  %v504_v29 = vld [vmem:[#allocation9] sm:$0xff]  ;;  %vm529_vm2 = vcmask 64512   ;;  %vm564_vm3 = vcmask 257024  }
  0x52   : > { %s1038_s16 = sshll.u32 %s1701_s7, 5  ;;  %vm637_vm4 = vcmask 519424   ;;  %vm705_vm5 = vcmask 781824   ;;  %vm773_vm6 = vcmask 1044224   ;;  %s1217_s22 = sshll.u32 %s1619_s25, 5 }
  0x53   : > { %467 = vmatpush.bf16.msra.mxu0 %v1078_v34  ;;  %s1737_s17 = scalar_lea.vmem [#allocation12], %s1038_s16  ;;  %s885_s10 = scalar_lea.hbm %s1825_s5, %s1217_s22 }
  0x54   : > { %480 = vmatpush.bf16.msra.mxu1 %v1082_v37  ;;  %s886_s9 = sshll.u32 %s1737_s17, 4  ;;  %s888_s11 = sshll.u32 %s885_s10, 4  ;;  %s887_s9 = int_to_ptr.vmem [resolvable:$true] %s886_s9  ;;  %s889_s11 = int_to_ptr.hbm [resolvable:$true] %s888_s11 }
  0x55   : > { %492 = vmatpush.bf16.msra.mxu2 %v1098_v51  ;;  %s860_s12 = scalar_lea.sflag [#allocation13], %s1701_s7  ;;  %s1459_s13 = sshra.s32 %s889_s11, 4  ;;  %s1460_s13 = int_to_ptr.hbm [resolvable:$true] %s1459_s13 }
  0x56   : > { %s1461_s15 = scalar_lea.hbm %s1460_s13, 32  ;;  %p1466_p5 = scmp.lt.s32.totalorder %s1460_s13, %s1825_s5 }
  0x57   : > { %468 = vmatpush.bf16.msra.mxu0 %v1066_v43  ;;  %p1462_p1 = scmp.ne.s32.totalorder %s1460_s13, %s1461_s15 }
  0x58   : > { %481 = vmatpush.bf16.msra.mxu1 %v1070_v46 }
  0x59   : > { %493 = vmatpush.bf16.msra.mxu2 %v1086_v60  ;;  %p1463_p3 = pnand %p1462_p1, %p1670_p12 }
  0x5b   : > { %469 = vmatpush.bf16.msra.mxu0 %v1054_v52  ;;  %p1464_p11 = pneg %p1463_p3 }
  0x5c   : > { %482 = vmatpush.bf16.msra.mxu1 %v1058_v55 }
  0x5d   : > { %494 = vmatpush.bf16.msra.mxu2 %v1074_v1 }
  0x5f   : > { %470 = vmatpush.bf16.msra.mxu0 %v1042_v61 }
  0x60   : > { %483 = vmatpush.bf16.msra.mxu1 %v1046_v0 }
  0x61   : > { %495 = vmatpush.bf16.msra.mxu2 %v1062_v5 }
  0x62   : > { %471 = vmatmul.bf16.vlgmr.msra.gmra.mxu0 %v302_v2 }
  0x63   : > { %484 = vmatmul.bf16.vlgmr.msra.gmra.mxu1 %v302_v2 }
  0x65   : > { %496 = vmatpush.bf16.msra.mxu2 %v1050_v8 }
  0x68   : > { %497 = vmatmul.bf16.vlgmr.msra.gmra.mxu2 %v302_v2 }
  0xdf   : > { %v472_v9 = vpop.f32.mrf.mxu0 }
  0xe0   : > { %v485_v10 = vpop.f32.mrf.mxu1 }
  0xe1   : > { %v502_v11 = vpack.c.bf16 %v485_v10, %v472_v9 }
  0xe3   : > { %566 = vrot.lane.b32.xlu1 %v502_v11, %s1560_s26  ;;  %v506_v12 = vrot.slane %v502_v11, 4  ;;  %v569_v13 = vunpack.c.l.b16 %v502_v11 }
  0xe5   : > { %v512_v14 = vsel %vm507_vm0, %v506_v12, 0  ;;  %v570_v15 = vpack.c.b16 %v569_v13, %v569_v13 }
  0xe6   : > { %521 = vmatpush.bf16.xpose.msra.mxu3 %v512_v14 }
  0xe7   : > { %571 = vrot.lane.b32.xlu2 %v570_v15, %s1560_s26  ;;  %v474_v16 = vpop.f32.mrf.mxu0 }
  0xe8   : > { %v487_v17 = vpop.f32.mrf.mxu1 }
  0xeb   : > { %639 = vrot.lane.b32.xlu1 %v502_v11, %s1561_s30  ;;  %v498_v18 = vpop.f32.mrf.mxu2 }
  0xec   : > { %v1727_v19 = vpack.c.bf16 %v498_v18, %v498_v18 }
  0xed   : > { %1135 = vmatmul.msk.bf16.vlgmr.msra.gmra.mxu3 %vm507_vm0, %v502_v11 }
  0xee   : > { %v548_v21 = vsel %vm546_vm1, %v1727_v19, 0  ;;  %v609_v3 = vunpack.c.l.b16 %v1727_v19 }
  0xef   : > { %707 = vrot.lane.b32.xlu2 %v502_v11, %s1562_s14  ;;  %557 = vmatpush.bf16.msrb.mxu3 %v548_v21 }
  0xf0   : > { %v610_v4 = vpack.c.b16 %v609_v3, %v609_v3 }
  0xf3   : > { %710 = vrot.lane.b32.xlu1 %v570_v15, %s1562_s14  ;;  %v500_v20 = vpop.f32.mrf.mxu2 }
 0x141   : > { %v572_v39 = vpop.permute.xlu2 %571 }
 0x149   : > { %v708_v41 = vpop.permute.xlu2 %707 }
 0x14a   : > { %v709_v43 = vrot.slane %v708_v41, 4 }
 0x14c   : > { %v716_v46 = vsel %vm507_vm0, %v709_v43, 0 }
 0x155   : > { %v567_v22 = vpop.permute.xlu1 %566 }
 0x156   : > { %v568_v23 = vrot.slane %v567_v22, 4 }
 0x158   : > { %v577_v24 = vsel %vm507_vm0, %v568_v23, 0 }
 0x159   : > { %586 = vmatpush.bf16.xpose.msra.mxu3 %v577_v24 }
 0x15d   : > { %v640_v25 = vpop.permute.xlu1 %639 }
 0x15e   : > { %v641_v26 = vrot.slane %v640_v25, 4 }
 0x160   : > { %v648_v27 = vsel %vm507_vm0, %v641_v26, 0 }
 0x161   : > { %657 = vmatpush.bf16.xpose.msrb.mxu2 %v648_v27 }
 0x165   : > { %v711_v48 = vpop.permute.xlu1 %710 }
 0x170   : > { %v523_v28 = vpop.f32.mrf.mxu3 }
 0x171   : > { %v527_v30 = vmul.f32 0.17677669, %v523_v28 }
 0x173   : > { %v528_v31 = vadd.f32 %v527_v30, %v504_v29 }
 0x175   : > { %v530_v32 = vsel %vm529_vm2, %v528_v31, -inf }
 0x176   : > { %531 = vmax.xlane.f32.xlu0 %v530_v32 }
 0x178   : > { %v525_v33 = vpop.f32.mrf.mxu3 }
 0x1e9   : > { %v532_v34 = vpop.xlane.xlu0 %531 }
 0x1ea   : > { %v533_v35 = vsub.f32 %v528_v31, %v532_v34 }
 0x1ec   : > { %v534_v36 = vmul.f32 1.442695, %v533_v35 }
 0x1ee   : > { %1309 = vpow2.f32 %v534_v36 }
 0x1f4   : > { %v1310_v37 = vpop.eup %1309 }
 0x1f5   : > { %v536_v38 = vsel %vm529_vm2, %v1310_v37, 0.0 }
 0x1f6   : > { %537 = vadd.xlane.f32.xlu0 %v536_v38 }
 0x20a   : > { %642 = vrot.lane.b32.xlu0 %v570_v15, %s1561_s30 }
 0x269   : > { %v538_v40 = vpop.xlane.xlu0 %537 }
 0x26a   : > { %1311 = vrcp.f32 %v538_v40 }
 0x270   : > { %v1312_v42 = vpop.eup %1311 }
 0x271   : > { %v540_v44 = vmul.f32 %v1312_v42, %v1310_v37 }
 0x273   : > { %541 = vst.msk [vmem:[%s1737_s17] sm:$0xff] %vm529_vm2, %v540_v44  ;;  %v542_v45 = vpack.c.bf16 %v540_v44, %v540_v44 }
 0x275   : > { %1136 = vmatmul.msk.bf16.vlgmr.msrb.gmra.mxu3 %vm529_vm2, %v542_v45 }
 0x276   : > { %725 = vmatpush.bf16.xpose.msrb.mxu3 %v716_v46 }
 0x27c   : > { %v643_v47 = vpop.permute.xlu0 %642 }
 0x27d   : > { %1140 = vmatmul.msk.bf16.vlgmr.msrb.gmra.mxu2 %vm507_vm0, %v643_v47  ;;  %v1216_v47 = vld [vmem:[#allocation8 + $0x38] sm:$0xff] }
 0x27e   : > { %840 = vmatpush.bf16.msrb.mxu1 %v1216_v47 }
 0x285   : > { %1137 = vmatmul.msk.bf16.vlgmr.msra.gmra.mxu3 %vm507_vm0, %v572_v39 }
 0x295   : > { %1143 = vmatmul.msk.bf16.vlgmr.msrb.gmra.mxu3 %vm507_vm0, %v711_v48  ;;  %v1215_v48 = vld [vmem:[#allocation8 + $0x30] sm:$0xff] }
 0x296   : > { %841 = vmatpush.bf16.msrb.mxu1 %v1215_v48 }
 0x2f8   : > { %v559_v49 = vpop.f32.mrf.mxu3 }
 0x2f9   : > { %v563_v50 = vpack.c.bf16 %v559_v49, %v559_v49  ;;  %v1214_v49 = vld [vmem:[#allocation8 + $0x28] sm:$0xff] }
 0x2fa   : > { %842 = vmatpush.bf16.msrb.mxu1 %v1214_v49 }
 0x2fb   : > { %565 = vst.msk [vmem:[#allocation2] sm:$0xf] %vm564_vm3, %v563_v50  ;;  %v1213_v50 = vld [vmem:[#allocation8 + $0x20] sm:$0xff] }
 0x2fe   : > { %843 = vmatpush.bf16.msrb.mxu1 %v1213_v50 }
 0x300   : > { %v561_v51 = vpop.f32.mrf.mxu3  ;;  %v659_v52 = vpop.f32.mrf.mxu2 }
 0x301   : > { %v663_v53 = vmul.f32 0.17677669, %v659_v52  ;;  %v1212_v51 = vld [vmem:[#allocation8 + $0x18] sm:$0xff]  ;;  %v1211_v52 = vld [vmem:[#allocation8 + $0x10] sm:$0xff] }
 0x302   : > { %844 = vmatpush.bf16.msrb.mxu1 %v1212_v51 }
 0x303   : > { %v664_v54 = vadd.f32 %v663_v53, %v504_v29 }
 0x305   : > { %v665_v55 = vsel %vm529_vm2, %v664_v54, -inf }
 0x306   : > { %666 = vmax.xlane.f32.xlu1 %v665_v55  ;;  %845 = vmatpush.bf16.msrb.mxu1 %v1211_v52  ;;  %v1210_v55 = vld [vmem:[#allocation8 + $0x8] sm:$0xff] }
 0x308   : > { %v588_v56 = vpop.f32.mrf.mxu3  ;;  %v661_v57 = vpop.f32.mrf.mxu2 }
 0x309   : > { %v592_v58 = vmul.f32 0.17677669, %v588_v56  ;;  %v1209_v56 = vld [vmem:[#allocation8] sm:$0xff] }
 0x30a   : > { %846 = vmatpush.bf16.msrb.mxu1 %v1210_v55 }
 0x30b   : > { %v593_v59 = vadd.f32 %v592_v58, %v504_v29 }
 0x30d   : > { %v594_v60 = vsel %vm529_vm2, %v593_v59, -inf }
 0x30e   : > { %595 = vmax.xlane.f32.xlu2 %v594_v60  ;;  %847 = vmatpush.bf16.msrb.mxu1 %v1209_v56 }
 0x310   : > { %v590_v61 = vpop.f32.mrf.mxu3 }
 0x318   : > { %v727_v62 = vpop.f32.mrf.mxu3 }
 0x319   : > { %v731_v63 = vmul.f32 0.17677669, %v727_v62 }
 0x31b   : > { %v732_v0 = vadd.f32 %v731_v63, %v504_v29 }
 0x31d   : > { %v733_v1 = vsel %vm529_vm2, %v732_v0, -inf }
 0x31e   : > { %734 = vmax.xlane.f32.xlu0 %v733_v1 }
 0x320   : > { %v729_v2 = vpop.f32.mrf.mxu3 }
 0x332   : > { %679 = vrot.lane.b32.xlu0 %v610_v4, %s1561_s30 }
 0x379   : > { %v667_v5 = vpop.xlane.xlu1 %666 }
 0x37a   : > { %v668_v6 = vsub.f32 %v664_v54, %v667_v5 }
 0x37c   : > { %v669_v7 = vmul.f32 1.442695, %v668_v6 }
 0x37e   : > { %1313 = vpow2.f32 %v669_v7 }
 0x381   : > { %v596_v8 = vpop.xlane.xlu2 %595 }
 0x382   : > { %v597_v9 = vsub.f32 %v593_v59, %v596_v8 }
 0x384   : > { %v1314_v10 = vpop.eup %1313  ;;  %v598_v11 = vmul.f32 1.442695, %v597_v9 }
 0x385   : > { %v671_v12 = vsel %vm529_vm2, %v1314_v10, 0.0 }
 0x386   : > { %1315 = vpow2.f32 %v598_v11  ;;  %672 = vadd.xlane.f32.xlu1 %v671_v12 }
 0x38c   : > { %v1316_v13 = vpop.eup %1315 }
 0x38d   : > { %v600_v14 = vsel %vm529_vm2, %v1316_v13, 0.0 }
 0x38e   : > { %601 = vadd.xlane.f32.xlu2 %v600_v14 }
 0x391   : > { %v735_v15 = vpop.xlane.xlu0 %734 }
 0x392   : > { %v736_v16 = vsub.f32 %v732_v0, %v735_v15 }
 0x394   : > { %v737_v17 = vmul.f32 1.442695, %v736_v16 }
 0x396   : > { %1317 = vpow2.f32 %v737_v17 }
 0x39c   : > { %v1318_v18 = vpop.eup %1317 }
 0x39d   : > { %v739_v19 = vsel %vm529_vm2, %v1318_v18, 0.0 }
 0x39e   : > { %740 = vadd.xlane.f32.xlu1 %v739_v19 }
 0x3a4   : > { %v680_v20 = vpop.permute.xlu0 %679 }
 0x3a5   : > { %v685_v21 = vsel %vm546_vm1, %v680_v20, 0 }
 0x3a6   : > { %611 = vrot.lane.b32.xlu2 %v610_v4, %s1560_s26  ;;  %694 = vmatpush.bf16.msra.mxu2 %v685_v21 }
 0x3b7   : > { %747 = vrot.lane.b32.xlu1 %v610_v4, %s1562_s14 }
 0x3f9   : > { %v673_v22 = vpop.xlane.xlu1 %672 }
 0x3fa   : > { %1319 = vrcp.f32 %v673_v22 }
 0x400   : > { %v1320_v23 = vpop.eup %1319 }
 0x401   : > { %v675_v24 = vmul.f32 %v1320_v23, %v1314_v10  ;;  %v602_v25 = vpop.xlane.xlu2 %601 }
 0x402   : > { %1321 = vrcp.f32 %v602_v25 }
 0x403   : > { %1141 = vst.msk [vmem:[%s1737_s17 + $0x10] sm:$0xff] %vm529_vm2, %v675_v24  ;;  %v678_v26 = vpack.c.bf16 %v675_v24, %v675_v24 }
 0x405   : > { %1142 = vmatmul.msk.bf16.vlgmr.msra.gmra.mxu2 %vm529_vm2, %v678_v26 }
 0x408   : > { %v1322_v27 = vpop.eup %1321 }
 0x409   : > { %v604_v28 = vmul.f32 %v1322_v27, %v1316_v13  ;;  %v612_v29 = vpop.permute.xlu2 %611 }
 0x40a   : > { %v617_v30 = vsel %vm546_vm1, %v612_v29, 0 }
 0x40b   : > { %1138 = vst.msk [vmem:[%s1737_s17 + $0x8] sm:$0xff] %vm529_vm2, %v604_v28  ;;  %626 = vmatpush.bf16.msrb.mxu0 %v617_v30  ;;  %v607_v31 = vpack.c.bf16 %v604_v28, %v604_v28 }
 0x40e   : > { %1139 = vmatmul.msk.bf16.vlgmr.msrb.gmra.mxu0 %vm529_vm2, %v607_v31 }
 0x411   : > { %v741_v32 = vpop.xlane.xlu1 %740 }
 0x412   : > { %1323 = vrcp.f32 %v741_v32 }
 0x418   : > { %v1324_v33 = vpop.eup %1323 }
 0x419   : > { %v743_v34 = vmul.f32 %v1324_v33, %v1318_v18 }
 0x41b   : > { %1144 = vst.msk [vmem:[%s1737_s17 + $0x18] sm:$0xff] %vm529_vm2, %v743_v34  ;;  %v746_v37 = vpack.c.bf16 %v743_v34, %v743_v34 }
 0x429   : > { %v748_v35 = vpop.permute.xlu1 %747 }
 0x42a   : > { %v753_v36 = vsel %vm546_vm1, %v748_v35, 0 }
 0x42b   : > { %762 = vmatpush.bf16.msra.mxu0 %v753_v36 }
 0x42e   : > { %1145 = vmatmul.msk.bf16.vlgmr.msra.gmra.mxu0 %vm529_vm2, %v746_v37 }
 0x488   : > { %v696_v38 = vpop.f32.mrf.mxu2 }
 0x489   : > { %v700_v43 = vpack.c.bf16 %v696_v38, %v696_v38 }
 0x48b   : > { %v628_v39 = vpop.f32.mrf.mxu0 }
 0x48c   : > { %v632_v40 = vpack.c.bf16 %v628_v39, %v628_v39 }
 0x48e   : > { %634 = vrot.lane.b32.xlu2 %v632_v40, %s1562_s14 }
 0x490   : > { %v698_v41 = vpop.f32.mrf.mxu2 }
 0x493   : > { %v630_v42 = vpop.f32.mrf.mxu0 }
 0x496   : > { %702 = vrot.lane.b32.xlu2 %v700_v43, %s1561_s30  ;;  %s1465_s30 = scalar_lea.hbm %s1825_s5, 128 }
 0x497   : > { %p1467_p6 = scmp.lt.s32.totalorder %s1465_s30, %s1461_s15 }
 0x499   : > { %p1468_p7 = por %p1467_p6, %p1466_p5 }
 0x49b   : > { %p1469_p8 = pnand %p1468_p7, %p1464_p11 }
 0x4ab   : > { %v764_v44 = vpop.f32.mrf.mxu0 }
 0x4ac   : > { %v768_v45 = vpack.c.bf16 %v764_v44, %v764_v44 }
 0x4ae   : > { %770 = vrot.lane.b32.xlu0 %v768_v45, %s1560_s26 }
 0x4b3   : > { %v766_v46 = vpop.f32.mrf.mxu0 }
 0x4e8   : > { %v635_v53 = vpop.permute.xlu2 %634 }
 0x4e9   : > { %638 = vst.msk [vmem:[#allocation2] sm:$0xf] %vm637_vm4, %v635_v53 }
 0x4f0   : > { %v703_v54 = vpop.permute.xlu2 %702 }
 0x4f1   : > { %706 = vst.msk [vmem:[#allocation2] sm:$0xf] %vm705_vm5, %v703_v54 }
 0x520   : > { %v771_v57 = vpop.permute.xlu0 %770 }
 0x521   : > { %774 = vst.msk [vmem:[#allocation2] sm:$0xf] %vm773_vm6, %v771_v57 }
 0x528   : > { %v775_v58 = vld [vmem:[#allocation2] sm:$0xf] }
 0x529   : > { %848 = vmatmul.bf16.vlgmr.msrb.gmra.mxu1 %v775_v58 }
 0x52a   : > { %1472 = shalt.err (!%p1469_p8)
}
 0x52b   : > { %s1563_s17 = smov 128   ;;  %s1564_s22 = smov 8  }
 0x52c   : > { %1233 = dma.vmem_to_hbm [thread:$0]  (%p1670_p12), %s887_s9, 512, %s889_s11, %s860_s12, %s1563_s17, %s1563_s17, %s1564_s22  }
 0x52d   : > { %s1180_s23 = sshll.u32 %s1619_s25, 3  ;;  %s1037_s27 = sshll.u32 %s1701_s7, 3 }
 0x52e   : > { %s870_s26 = scalar_lea.hbm %s1824_s4, %s1180_s23  ;;  %s293_s13 = scalar_lea.vmem [#allocation11], %s1037_s27 }
 0x52f   : > { %s872_s15 = sshll.u32 %s293_s13, 4  ;;  %s874_s30 = sshll.u32 %s870_s26, 4  ;;  %s873_s15 = int_to_ptr.vmem [resolvable:$true] %s872_s15  ;;  %s875_s30 = int_to_ptr.hbm [resolvable:$true] %s874_s30 }
 0x530   : > { %s855_s14 = scalar_lea.sflag [#allocation5], %s1701_s7  ;;  %s1487_s16 = sshra.s32 %s875_s30, 4  ;;  %s1488_s16 = int_to_ptr.hbm [resolvable:$true] %s1487_s16 }
 0x531   : > { %s1489_s0 = scalar_lea.hbm %s1488_s16, 8  ;;  %s1493_s11 = scalar_lea.hbm %s1824_s4, 32 }
 0x532   : > { %p1490_p9 = scmp.ne.s32.totalorder %s1488_s16, %s1489_s0  ;;  %p1494_p0 = scmp.lt.s32.totalorder %s1488_s16, %s1824_s4 }
 0x533   : > { %p1495_p4 = scmp.lt.s32.totalorder %s1493_s11, %s1489_s0 }
 0x534   : > { %p1491_p10 = pnand %p1490_p9, %p1670_p12 }
 0x535   : > { %p1496_p1 = por %p1495_p4, %p1494_p0 }
 0x536   : > { %p1492_p13 = pneg %p1491_p10 }
 0x538   : > { %p1497_p3 = pnand %p1496_p1, %p1492_p13 }
 0x5a6   : > { %v849_v59 = vpop.f32.mrf.mxu1 }
 0x5a7   : > { %853 = vst [vmem:[%s293_s13] sm:$0xff] %v849_v59 }
 0x5a8   : > { %1500 = shalt.err (!%p1497_p3)
}
 0x5a9   : > { %1232 = dma.vmem_to_hbm [thread:$0]  (%p1670_p12), %s873_s15, 128, %s875_s30, %s855_s14  }
 0x5ae   : > { %v851_v60 = vpop.f32.mrf.mxu1 }
 0x5af PF: > { %p1264_p11 = scmp.ge.s32.totalorder %s1551_s21, 2  ;;  %s903_s7 = sand.u32 1, %s1539_s18  }
 0x5b0   : > { %s904_s22 = scalar_lea.sflag [#allocation5], %s903_s7 }
 0x5b1   : > { %p1251_p5 = pnand %p1264_p11, %p1675_p2 }
 0x5b3   : > { %p1252_p6 = pneg %p1251_p5 }
 0x5b5   : > { %1530 = dma.done.wait (%p1252_p6), %s904_s22, 128  }
 0x5b6   : > { %1532 = vsyncadd (%p1252_p6), %s904_s22, 4294967168  ;;  %s914_s0 = scalar_lea.sflag [#allocation13], %s903_s7 }
 0x5b7   : > { %1534 = dma.done.wait (%p1252_p6), %s914_s0, 512  }
 0x5b8   : > { %1536 = vsyncadd (%p1252_p6), %s914_s0, 4294966784  ;;  %p24_p12 = scmp.ge.s32.totalorder %s1650_s24, 6   ;;  %s1834_s18 = smov %s1543_s19 }
 0x5b9   : > { %s1835_s19 = smov %s1547_s20  ;;  %s1836_s20 = smov %s1662_s29 }
 0x5ba   : > { %s1837_s21 = smov %s1650_s24  ;;  %26 = sbr.rel (!%p24_p12) target bundleno = 11 (0xb), region = 113 }
 0x5bf   :  { %920 = vsyncpa [#allocation4], 1 }
 0x5c0   :  { %922 = vsyncpa [#allocation4 + $0x1], 1 }
 0x5c1   :  { %923 = vsyncpa [#allocation7], 1 }
 0x5c2   :  { %924 = vsyncpa [#allocation10], 1 }
 0x5c3   :  { %925 = vsyncpa [#allocation5], 1 }
 0x5c4   :  { %927 = vsyncpa [#allocation5 + $0x1], 1 }
 0x5c5   :  { %928 = vsyncpa [#allocation13], 1 }
 0x5c6   :  { %930 = vsyncpa [#allocation13 + $0x1], 1 }

</bundles_post_ra>
